<compile_context>
chip_gen: v6e
topology: v6e:2x2x1
jax: 0.10.0
libtpu: 0.0.40
codegen_flags: <defaults>
</compile_context>

<pallas_src>
import functools

import jax
import jax.numpy as jnp
from jax.experimental import pallas as pl
from jax.experimental.pallas import tpu as pltpu

# ------------------------- small synthetic CLIP-ViT config -------------------------
IMG = 16          # image spatial size
PATCH = 8         # patch size  -> 4 patches
CHANS = 3
HIDDEN = 32       # vision_embed_dim
HEADS = 2
HEAD_DIM = HIDDEN // HEADS
MLP_DIM = 64
LAYERS = 2
N_PATCHES = (IMG // PATCH) ** 2
TOKENS = N_PATCHES + 1          # +1 CLS token
PATCH_DIM = CHANS * PATCH * PATCH
HEAD_HIDDEN = 256               # nn.Linear(vision_embed_dim, 256)
LABELS = 5                      # args.label_number
LN_EPS = 1e-5


# ------------------------------- Pallas kernels ------------------------------------
def _ln(x, g, b):
    """f32 LayerNorm over the last (lane) dim."""
    mu = jnp.mean(x, axis=-1, keepdims=True)
    var = jnp.mean(jnp.square(x - mu), axis=-1, keepdims=True)
    return (x - mu) * jax.lax.rsqrt(var + LN_EPS) * g + b


def _mm(x, w):
    """bf16 MXU matmul with f32 accumulation."""
    return jnp.dot(x.astype(jnp.bfloat16), w.astype(jnp.bfloat16),
                   preferred_element_type=jnp.float32)


def _vit_frame_kernel(patches_ref, patch_w_ref, tok_bias_ref, pre_g_ref, pre_b_ref,
                      ln1_g_ref, ln1_b_ref, wqkv_ref, bqkv_ref, wo_ref, bo_ref,
                      ln2_g_ref, ln2_b_ref, w1_ref, b1_ref, w2_ref, b2_ref,
                      cls_ref):
    """One grid step = one frame.  Fused CLIP vision transformer; emits the CLS row."""
    # patch embedding: row 0 of patches is all-zero (CLS slot), so the matmul yields 0
    # there and tok_bias (= pos_emb with class_emb folded into row 0) supplies the CLS
    # embedding.  CLIP's patch conv has no bias.
    h = _mm(patches_ref[0], patch_w_ref[...]) + tok_bias_ref[...]        # (T, D) f32
    h = _ln(h, pre_g_ref[...], pre_b_ref[...])                           # pre_layrnorm

    scale = float(HEAD_DIM) ** -0.5
    for l in range(LAYERS):                       # static unroll over encoder layers
        # ---------------- self-attention block ----------------
        x = _ln(h, ln1_g_ref[l], ln1_b_ref[l])
        qkv = _mm(x, wqkv_ref[l]) + bqkv_ref[l]                          # (T, 3D) f32
        attn = jnp.zeros((TOKENS, HIDDEN), jnp.float32)
        for hd in range(HEADS):                   # static unroll over heads
            lo = hd * HEAD_DIM
            q = qkv[:, lo:lo + HEAD_DIM]
            k = qkv[:, HIDDEN + lo:HIDDEN + lo + HEAD_DIM]
            v = qkv[:, 2 * HIDDEN + lo:2 * HIDDEN + lo + HEAD_DIM]
            # scores = q @ k^T (contraction on the head dim of both operands)
            s = jax.lax.dot_general(q.astype(jnp.bfloat16), k.astype(jnp.bfloat16),
                                    (((1,), (1,)), ((), ())),
                                    preferred_element_type=jnp.float32) * scale
            s = s - jnp.max(s, axis=-1, keepdims=True)
            p = jnp.exp(s)
            p = p * pl.reciprocal(jnp.sum(p, axis=-1, keepdims=True), approx=True)
            o = _mm(p, v)                                                # (T, HEAD_DIM)
            # out-projection, accumulated per head (avoids a lane-concat)
            attn = attn + _mm(o, wo_ref[l, lo:lo + HEAD_DIM, :])
        h = h + attn + bo_ref[l]                                         # residual

        # ---------------- MLP block (CLIP quick-GELU) ----------------
        x = _ln(h, ln2_g_ref[l], ln2_b_ref[l])
        x = _mm(x, w1_ref[l]) + b1_ref[l]
        x = x * jax.nn.sigmoid(1.702 * x)          # quick-GELU, kept in f32 (v5e-safe)
        x = _mm(x, w2_ref[l]) + b2_ref[l]
        h = h + x                                                        # residual

    cls_ref[0] = h[0:1, :].astype(cls_ref.dtype)   # CLS token of the last hidden state


def pallas_vit_cls(patches_ext, pp):
    """Run the fused ViT over all frames; returns (B, 1, HIDDEN) CLS tokens."""
    B, T, PD = patches_ext.shape
    c2 = lambda i: (0, 0)
    c3 = lambda i: (0, 0, 0)
    in_specs = [
        pl.BlockSpec((1, T, PD), lambda i: (i, 0, 0)),               # patches (per frame)
        pl.BlockSpec((PD, HIDDEN), c2),                              # patch_w  (K,N) bf16
        pl.BlockSpec((T, HIDDEN), c2),                               # tok_bias (pos+cls)
        pl.BlockSpec((1, HIDDEN), c2),                               # pre-LN gamma
        pl.BlockSpec((1, HIDDEN), c2),                               # pre-LN beta
        pl.BlockSpec((LAYERS, 1, HIDDEN), c3),                       # ln1_g
        pl.BlockSpec((LAYERS, 1, HIDDEN), c3),                       # ln1_b
        pl.BlockSpec((LAYERS, HIDDEN, 3 * HIDDEN), c3),              # fused qkv weight
        pl.BlockSpec((LAYERS, 1, 3 * HIDDEN), c3),                   # fused qkv bias
        pl.BlockSpec((LAYERS, HIDDEN, HIDDEN), c3),                  # out-proj weight
        pl.BlockSpec((LAYERS, 1, HIDDEN), c3),                       # out-proj bias
        pl.BlockSpec((LAYERS, 1, HIDDEN), c3),                       # ln2_g
        pl.BlockSpec((LAYERS, 1, HIDDEN), c3),                       # ln2_b
        pl.BlockSpec((LAYERS, HIDDEN, MLP_DIM), c3),                 # fc1 weight
        pl.BlockSpec((LAYERS, 1, MLP_DIM), c3),                      # fc1 bias
        pl.BlockSpec((LAYERS, MLP_DIM, HIDDEN), c3),                 # fc2 weight
        pl.BlockSpec((LAYERS, 1, HIDDEN), c3),                       # fc2 bias
    ]
    return pl.pallas_call(
        _vit_frame_kernel,
        grid=(B,),
        in_specs=in_specs,
        out_specs=pl.BlockSpec((1, 1, HIDDEN), lambda i: (i, 0, 0)),
        out_shape=jax.ShapeDtypeStruct((B, 1, HIDDEN), jnp.float32),
        compiler_params=pltpu.CompilerParams(dimension_semantics=("parallel",)),
    )(patches_ext, pp["patch_w"], pp["tok_bias"], pp["pre_g"], pp["pre_b"],
      pp["ln1_g"], pp["ln1_b"], pp["wqkv"], pp["bqkv"], pp["wo"], pp["bo"],
      pp["ln2_g"], pp["ln2_b"], pp["w1"], pp["b1"], pp["w2"], pp["b2"])


def _head_kernel(cls_ref, w1_ref, b1_ref, w2_ref, b2_ref, o_ref, *, inv_frames):
    """One grid step = one video: frame-mean CLS -> Linear -> ReLU -> Linear."""
    x = cls_ref[0]                                                     # (F, D) f32
    pooled = jnp.sum(x, axis=0, keepdims=True) * inv_frames            # sum(dim=1)/F
    h = jnp.dot(pooled.astype(jnp.bfloat16), w1_ref[...],
                preferred_element_type=jnp.float32) + b1_ref[...]
    # nn.Dropout(p) is identity at inference time.
    h = jnp.maximum(h, 0.0)
    y = jnp.dot(h.astype(jnp.bfloat16), w2_ref[...],
                preferred_element_type=jnp.float32) + b2_ref[...]
    o_ref[0] = y.astype(o_ref.dtype)


def pallas_classification_head(frames_cls, pp):
    BL, F, D = frames_cls.shape
    kern = functools.partial(_head_kernel, inv_frames=1.0 / float(F))
    out = pl.pallas_call(
        kern,
        grid=(BL,),
        in_specs=[
            pl.BlockSpec((1, F, D), lambda i: (i, 0, 0)),
            pl.BlockSpec((HIDDEN, HEAD_HIDDEN), lambda i: (0, 0)),
            pl.BlockSpec((1, HEAD_HIDDEN), lambda i: (0, 0)),
            pl.BlockSpec((HEAD_HIDDEN, LABELS), lambda i: (0, 0)),
            pl.BlockSpec((1, LABELS), lambda i: (0, 0)),
        ],
        out_specs=pl.BlockSpec((1, 1, LABELS), lambda i: (i, 0, 0)),
        out_shape=jax.ShapeDtypeStruct((BL, 1, LABELS), jnp.float32),
        compiler_params=pltpu.CompilerParams(dimension_semantics=("parallel",)),
    )(frames_cls, pp["head_w1"], pp["head_b1"], pp["head_w2"], pp["head_b2"])
    return out.reshape(BL, LABELS)


# --------------------------- synthetic parameter init ------------------------------
def init_params(key):
    # TODO(synk): CLIPVisionModel.from_pretrained loads a checkpoint; here we synthesize
    # deterministic weights of the same structure (torch layout) instead.
    ks = iter(jax.random.split(key, 16 + LAYERS * 16))
    n = lambda shape, s=0.02: jax.random.normal(next(ks), shape, jnp.float32) * s
    params = {
        "patch_w": n((HIDDEN, PATCH_DIM)),          # conv weight flattened (C,kh,kw)
        "class_emb": n((HIDDEN,)),
        "pos_emb": n((TOKENS, HIDDEN)),
        "pre_ln_g": jnp.ones((HIDDEN,), jnp.float32),
        "pre_ln_b": jnp.zeros((HIDDEN,), jnp.float32),
        "layers": [],
        "head_w1": n((HEAD_HIDDEN, HIDDEN)),
        "head_b1": jnp.zeros((HEAD_HIDDEN,), jnp.float32),
        "head_w2": n((LABELS, HEAD_HIDDEN)),
        "head_b2": jnp.zeros((LABELS,), jnp.float32),
    }
    for _ in range(LAYERS):
        params["layers"].append({
            "ln1_g": jnp.ones((HIDDEN,), jnp.float32), "ln1_b": jnp.zeros((HIDDEN,), jnp.float32),
            "q_w": n((HIDDEN, HIDDEN)), "q_b": jnp.zeros((HIDDEN,), jnp.float32),
            "k_w": n((HIDDEN, HIDDEN)), "k_b": jnp.zeros((HIDDEN,), jnp.float32),
            "v_w": n((HIDDEN, HIDDEN)), "v_b": jnp.zeros((HIDDEN,), jnp.float32),
            "o_w": n((HIDDEN, HIDDEN)), "o_b": jnp.zeros((HIDDEN,), jnp.float32),
            "ln2_g": jnp.ones((HIDDEN,), jnp.float32), "ln2_b": jnp.zeros((HIDDEN,), jnp.float32),
            "fc1_w": n((MLP_DIM, HIDDEN)), "fc1_b": jnp.zeros((MLP_DIM,), jnp.float32),
            "fc2_w": n((HIDDEN, MLP_DIM)), "fc2_b": jnp.zeros((HIDDEN,), jnp.float32),
        })
    return params


def pack_params(p):
    """One-time repack: transpose torch (N,K) weights to (K,N), fuse QKV, stack per-layer
    weights along a leading LAYERS axis, cast matmul weights to bf16."""
    t16 = lambda w: jnp.asarray(w.T, jnp.bfloat16)
    lyr = p["layers"]
    packed = {
        "patch_w": t16(p["patch_w"]),                                  # (PD, D) bf16
        "tok_bias": p["pos_emb"].at[0].add(p["class_emb"]),            # (T, D)  f32
        "pre_g": p["pre_ln_g"].reshape(1, HIDDEN),
        "pre_b": p["pre_ln_b"].reshape(1, HIDDEN),
        "ln1_g": jnp.stack([l["ln1_g"].reshape(1, HIDDEN) for l in lyr]),
        "ln1_b": jnp.stack([l["ln1_b"].reshape(1, HIDDEN) for l in lyr]),
        "wqkv": jnp.stack([t16(jnp.concatenate([l["q_w"], l["k_w"], l["v_w"]], axis=0))
                           for l in lyr]),                             # (L, D, 3D) bf16
        "bqkv": jnp.stack([jnp.concatenate([l["q_b"], l["k_b"], l["v_b"]]).reshape(1, 3 * HIDDEN)
                           for l in lyr]),
        "wo": jnp.stack([t16(l["o_w"]) for l in lyr]),                 # (L, D, D) bf16
        "bo": jnp.stack([l["o_b"].reshape(1, HIDDEN) for l in lyr]),
        "ln2_g": jnp.stack([l["ln2_g"].reshape(1, HIDDEN) for l in lyr]),
        "ln2_b": jnp.stack([l["ln2_b"].reshape(1, HIDDEN) for l in lyr]),
        "w1": jnp.stack([t16(l["fc1_w"]) for l in lyr]),               # (L, D, MLP) bf16
        "b1": jnp.stack([l["fc1_b"].reshape(1, MLP_DIM) for l in lyr]),
        "w2": jnp.stack([t16(l["fc2_w"]) for l in lyr]),               # (L, MLP, D) bf16
        "b2": jnp.stack([l["fc2_b"].reshape(1, HIDDEN) for l in lyr]),
        "head_w1": t16(p["head_w1"]),                                  # (D, 256) bf16
        "head_b1": p["head_b1"].reshape(1, HEAD_HIDDEN),
        "head_w2": t16(p["head_w2"]),                                  # (256, LABELS) bf16
        "head_b2": p["head_b2"].reshape(1, LABELS),
    }
    return packed


# ------------------------------- model forward --------------------------------------
def vision_model_forward(pixel_values, batch_length, packed):
    """Mirrors VisionModel.forward (inference)."""
    B = pixel_values.shape[0]
    # patchify NCHW -> (B, n_patches, C*P*P); patch vector ordered (C, kh, kw) to match
    # torch Conv2d weight flattening.
    # TODO(synk): patch extraction is a 6-D transpose with no clean BlockSpec/index_map
    # equivalent; kept as a single XLA pass over the raw pixels.
    nh = IMG // PATCH
    patches = pixel_values.reshape(B, CHANS, nh, PATCH, nh, PATCH)
    patches = patches.transpose(0, 2, 4, 1, 3, 5).reshape(B, N_PATCHES, PATCH_DIM)
    # prepend an all-zero "CLS" patch so the fused kernel produces all TOKENS rows in
    # one matmul (the class embedding is folded into tok_bias row 0).
    patches_ext = jnp.concatenate(
        [jnp.zeros((B, 1, PATCH_DIM), patches.dtype), patches], axis=1)   # (B, T, PD)

    cls_tokens = pallas_vit_cls(patches_ext, packed)                      # (B, 1, D)
    frames_cls = cls_tokens.reshape(batch_length, -1, HIDDEN)             # (bl, F, D)
    return pallas_classification_head(frames_cls, packed)                 # (bl, LABELS)


# ------------------------------------- main ------------------------------------------
if __name__ == "__main__":
    key = jax.random.PRNGKey(0)
    k_img, k_par = jax.random.split(key)

    batch_length = 2     # number of videos
    num_frames = 2       # frames per video
    B = batch_length * num_frames

    pixel_values = jax.random.normal(k_img, (B, CHANS, IMG, IMG), jnp.float32)  # NCHW
    params = init_params(k_par)
    packed = pack_params(params)       # one-time weight transpose / fuse / bf16 cast

    fwd = jax.jit(vision_model_forward, static_argnums=(1,))
    out = fwd(pixel_values, batch_length, packed)
    out = jax.block_until_ready(out)

    assert out.shape == (batch_length, LABELS), out.shape
    assert jnp.all(jnp.isfinite(out))
    print("KERNEL_OK")
</pallas_src>

<mosaic_0001>
module attributes {stable_mosaic.version = 11 : i64} {
  func.func @_vit_frame_kernel(%arg0: i32, %arg1: memref<1x5x192xf32, #tpu.memory_space<vmem>>, %arg2: memref<192x32xbf16, #tpu.memory_space<vmem>>, %arg3: memref<5x32xf32, #tpu.memory_space<vmem>>, %arg4: memref<1x32xf32, #tpu.memory_space<vmem>>, %arg5: memref<1x32xf32, #tpu.memory_space<vmem>>, %arg6: memref<2x1x32xf32, #tpu.memory_space<vmem>>, %arg7: memref<2x1x32xf32, #tpu.memory_space<vmem>>, %arg8: memref<2x32x96xbf16, #tpu.memory_space<vmem>>, %arg9: memref<2x1x96xf32, #tpu.memory_space<vmem>>, %arg10: memref<2x32x32xbf16, #tpu.memory_space<vmem>>, %arg11: memref<2x1x32xf32, #tpu.memory_space<vmem>>, %arg12: memref<2x1x32xf32, #tpu.memory_space<vmem>>, %arg13: memref<2x1x32xf32, #tpu.memory_space<vmem>>, %arg14: memref<2x32x64xbf16, #tpu.memory_space<vmem>>, %arg15: memref<2x1x64xf32, #tpu.memory_space<vmem>>, %arg16: memref<2x64x32xbf16, #tpu.memory_space<vmem>>, %arg17: memref<2x1x32xf32, #tpu.memory_space<vmem>>, %arg18: memref<1x1x32xf32, #tpu.memory_space<vmem>>) attributes {dimension_semantics = [#tpu.dimension_semantics<parallel>], iteration_bounds = array<i64: 4>, scalar_prefetch = 0 : i64, scratch_operands = 0 : i64, tpu.core_type = #tpu.core_type<tc>, window_params = [{transform_indices = @transform_0, window_bounds = array<i64: 1, 5, 192>}, {pipeline_mode = #tpu.pipeline_mode<synchronous>, transform_indices = @transform_1, window_bounds = array<i64: 192, 32>}, {pipeline_mode = #tpu.pipeline_mode<synchronous>, transform_indices = @transform_2, window_bounds = array<i64: 5, 32>}, {pipeline_mode = #tpu.pipeline_mode<synchronous>, transform_indices = @transform_3, window_bounds = array<i64: 1, 32>}, {pipeline_mode = #tpu.pipeline_mode<synchronous>, transform_indices = @transform_4, window_bounds = array<i64: 1, 32>}, {pipeline_mode = #tpu.pipeline_mode<synchronous>, transform_indices = @transform_5, window_bounds = array<i64: 2, 1, 32>}, {pipeline_mode = #tpu.pipeline_mode<synchronous>, transform_indices = @transform_6, window_bounds = array<i64: 2, 1, 32>}, {pipeline_mode = #tpu.pipeline_mode<synchronous>, transform_indices = @transform_7, window_bounds = array<i64: 2, 32, 96>}, {pipeline_mode = #tpu.pipeline_mode<synchronous>, transform_indices = @transform_8, window_bounds = array<i64: 2, 1, 96>}, {pipeline_mode = #tpu.pipeline_mode<synchronous>, transform_indices = @transform_9, window_bounds = array<i64: 2, 32, 32>}, {pipeline_mode = #tpu.pipeline_mode<synchronous>, transform_indices = @transform_10, window_bounds = array<i64: 2, 1, 32>}, {pipeline_mode = #tpu.pipeline_mode<synchronous>, transform_indices = @transform_11, window_bounds = array<i64: 2, 1, 32>}, {pipeline_mode = #tpu.pipeline_mode<synchronous>, transform_indices = @transform_12, window_bounds = array<i64: 2, 1, 32>}, {pipeline_mode = #tpu.pipeline_mode<synchronous>, transform_indices = @transform_13, window_bounds = array<i64: 2, 32, 64>}, {pipeline_mode = #tpu.pipeline_mode<synchronous>, transform_indices = @transform_14, window_bounds = array<i64: 2, 1, 64>}, {pipeline_mode = #tpu.pipeline_mode<synchronous>, transform_indices = @transform_15, window_bounds = array<i64: 2, 64, 32>}, {pipeline_mode = #tpu.pipeline_mode<synchronous>, transform_indices = @transform_16, window_bounds = array<i64: 2, 1, 32>}, {transform_indices = @transform_17, window_bounds = array<i64: 1, 1, 32>}]} {
    %c0 = arith.constant 0 : index
    %c0_0 = arith.constant 0 : index
    %c0_1 = arith.constant 0 : index
    %0 = vector.load %arg1[%c0, %c0_0, %c0_1] : memref<1x5x192xf32, #tpu.memory_space<vmem>>, vector<1x5x192xf32>
    %1 = vector.shape_cast %0 : vector<1x5x192xf32> to vector<5x192xf32>
    %c0_2 = arith.constant 0 : index
    %c0_3 = arith.constant 0 : index
    %2 = vector.load %arg2[%c0_2, %c0_3] : memref<192x32xbf16, #tpu.memory_space<vmem>>, vector<192x32xbf16>
    %3 = arith.truncf %1 : vector<5x192xf32> to vector<5x192xbf16>
    %cst = arith.constant dense<0.000000e+00> : vector<5x32xf32>
    %4 = tpu.matmul %3, %2, %cst {dimension_numbers = #tpu.dot_dimension_numbers<[1], [0], [0], [1], [0, 0, 1, 1], [], []>} : vector<5x192xbf16>, vector<192x32xbf16>, vector<5x32xf32> -> vector<5x32xf32>
    %c0_4 = arith.constant 0 : index
    %c0_5 = arith.constant 0 : index
    %5 = vector.load %arg3[%c0_4, %c0_5] : memref<5x32xf32, #tpu.memory_space<vmem>>, vector<5x32xf32>
    %6 = arith.addf %4, %5 : vector<5x32xf32>
    %c0_6 = arith.constant 0 : index
    %c0_7 = arith.constant 0 : index
    %7 = vector.load %arg4[%c0_6, %c0_7] : memref<1x32xf32, #tpu.memory_space<vmem>>, vector<1x32xf32>
    %c0_8 = arith.constant 0 : index
    %c0_9 = arith.constant 0 : index
    %8 = vector.load %arg5[%c0_8, %c0_9] : memref<1x32xf32, #tpu.memory_space<vmem>>, vector<1x32xf32>
    %cst_10 = arith.constant dense<0.000000e+00> : vector<5xf32>
    %9 = vector.multi_reduction <add>, %6, %cst_10 [1] : vector<5x32xf32> to vector<5xf32>
    %10 = vector.shape_cast %9 : vector<5xf32> to vector<5x1xf32>
    %cst_11 = arith.constant 3.200000e+01 : f32
    %11 = vector.broadcast %cst_11 : f32 to vector<5x1xf32>
    %12 = arith.divf %10, %11 : vector<5x1xf32>
    %13 = vector.broadcast %12 : vector<5x1xf32> to vector<5x32xf32>
    %14 = arith.subf %6, %13 : vector<5x32xf32>
    %15 = arith.mulf %14, %14 : vector<5x32xf32>
    %cst_12 = arith.constant dense<0.000000e+00> : vector<5xf32>
    %16 = vector.multi_reduction <add>, %15, %cst_12 [1] : vector<5x32xf32> to vector<5xf32>
    %17 = vector.shape_cast %16 : vector<5xf32> to vector<5x1xf32>
    %cst_13 = arith.constant 3.200000e+01 : f32
    %18 = vector.broadcast %cst_13 : f32 to vector<5x1xf32>
    %19 = arith.divf %17, %18 : vector<5x1xf32>
    %20 = vector.broadcast %12 : vector<5x1xf32> to vector<5x32xf32>
    %21 = arith.subf %6, %20 : vector<5x32xf32>
    %cst_14 = arith.constant 9.99999974E-6 : f32
    %22 = vector.broadcast %cst_14 : f32 to vector<5x1xf32>
    %23 = arith.addf %19, %22 : vector<5x1xf32>
    %24 = math.rsqrt %23 : vector<5x1xf32>
    %25 = vector.broadcast %24 : vector<5x1xf32> to vector<5x32xf32>
    %26 = arith.mulf %21, %25 : vector<5x32xf32>
    %27 = vector.broadcast %7 : vector<1x32xf32> to vector<5x32xf32>
    %28 = arith.mulf %26, %27 : vector<5x32xf32>
    %29 = vector.broadcast %8 : vector<1x32xf32> to vector<5x32xf32>
    %30 = arith.addf %28, %29 : vector<5x32xf32>
    %c0_15 = arith.constant 0 : index
    %c0_16 = arith.constant 0 : index
    %c0_17 = arith.constant 0 : index
    %31 = vector.load %arg6[%c0_15, %c0_16, %c0_17] : memref<2x1x32xf32, #tpu.memory_space<vmem>>, vector<1x1x32xf32>
    %32 = vector.shape_cast %31 : vector<1x1x32xf32> to vector<1x32xf32>
    %c0_18 = arith.constant 0 : index
    %c0_19 = arith.constant 0 : index
    %c0_20 = arith.constant 0 : index
    %33 = vector.load %arg7[%c0_18, %c0_19, %c0_20] : memref<2x1x32xf32, #tpu.memory_space<vmem>>, vector<1x1x32xf32>
    %34 = vector.shape_cast %33 : vector<1x1x32xf32> to vector<1x32xf32>
    %cst_21 = arith.constant dense<0.000000e+00> : vector<5xf32>
    %35 = vector.multi_reduction <add>, %30, %cst_21 [1] : vector<5x32xf32> to vector<5xf32>
    %36 = vector.shape_cast %35 : vector<5xf32> to vector<5x1xf32>
    %cst_22 = arith.constant 3.200000e+01 : f32
    %37 = vector.broadcast %cst_22 : f32 to vector<5x1xf32>
    %38 = arith.divf %36, %37 : vector<5x1xf32>
    %39 = vector.broadcast %38 : vector<5x1xf32> to vector<5x32xf32>
    %40 = arith.subf %30, %39 : vector<5x32xf32>
    %41 = arith.mulf %40, %40 : vector<5x32xf32>
    %cst_23 = arith.constant dense<0.000000e+00> : vector<5xf32>
    %42 = vector.multi_reduction <add>, %41, %cst_23 [1] : vector<5x32xf32> to vector<5xf32>
    %43 = vector.shape_cast %42 : vector<5xf32> to vector<5x1xf32>
    %cst_24 = arith.constant 3.200000e+01 : f32
    %44 = vector.broadcast %cst_24 : f32 to vector<5x1xf32>
    %45 = arith.divf %43, %44 : vector<5x1xf32>
    %46 = vector.broadcast %38 : vector<5x1xf32> to vector<5x32xf32>
    %47 = arith.subf %30, %46 : vector<5x32xf32>
    %cst_25 = arith.constant 9.99999974E-6 : f32
    %48 = vector.broadcast %cst_25 : f32 to vector<5x1xf32>
    %49 = arith.addf %45, %48 : vector<5x1xf32>
    %50 = math.rsqrt %49 : vector<5x1xf32>
    %51 = vector.broadcast %50 : vector<5x1xf32> to vector<5x32xf32>
    %52 = arith.mulf %47, %51 : vector<5x32xf32>
    %53 = vector.broadcast %32 : vector<1x32xf32> to vector<5x32xf32>
    %54 = arith.mulf %52, %53 : vector<5x32xf32>
    %55 = vector.broadcast %34 : vector<1x32xf32> to vector<5x32xf32>
    %56 = arith.addf %54, %55 : vector<5x32xf32>
    %c0_26 = arith.constant 0 : index
    %c0_27 = arith.constant 0 : index
    %c0_28 = arith.constant 0 : index
    %57 = vector.load %arg8[%c0_26, %c0_27, %c0_28] : memref<2x32x96xbf16, #tpu.memory_space<vmem>>, vector<1x32x96xbf16>
    %58 = vector.shape_cast %57 : vector<1x32x96xbf16> to vector<32x96xbf16>
    %59 = arith.truncf %56 : vector<5x32xf32> to vector<5x32xbf16>
    %cst_29 = arith.constant dense<0.000000e+00> : vector<5x96xf32>
    %60 = tpu.matmul %59, %58, %cst_29 {dimension_numbers = #tpu.dot_dimension_numbers<[1], [0], [0], [1], [0, 0, 1, 1], [], []>} : vector<5x32xbf16>, vector<32x96xbf16>, vector<5x96xf32> -> vector<5x96xf32>
    %c0_30 = arith.constant 0 : index
    %c0_31 = arith.constant 0 : index
    %c0_32 = arith.constant 0 : index
    %61 = vector.load %arg9[%c0_30, %c0_31, %c0_32] : memref<2x1x96xf32, #tpu.memory_space<vmem>>, vector<1x1x96xf32>
    %62 = vector.shape_cast %61 : vector<1x1x96xf32> to vector<1x96xf32>
    %63 = vector.broadcast %62 : vector<1x96xf32> to vector<5x96xf32>
    %64 = arith.addf %60, %63 : vector<5x96xf32>
    %cst_33 = arith.constant 0.000000e+00 : f32
    %65 = vector.broadcast %cst_33 : f32 to vector<5x32xf32>
    %66 = vector.extract_strided_slice %64 {offsets = [0, 0], sizes = [5, 16], strides = [1, 1]} : vector<5x96xf32> to vector<5x16xf32>
    %67 = vector.extract_strided_slice %64 {offsets = [0, 32], sizes = [5, 16], strides = [1, 1]} : vector<5x96xf32> to vector<5x16xf32>
    %68 = vector.extract_strided_slice %64 {offsets = [0, 64], sizes = [5, 16], strides = [1, 1]} : vector<5x96xf32> to vector<5x16xf32>
    %69 = arith.truncf %66 : vector<5x16xf32> to vector<5x16xbf16>
    %70 = arith.truncf %67 : vector<5x16xf32> to vector<5x16xbf16>
    %cst_34 = arith.constant dense<0.000000e+00> : vector<5x5xf32>
    %71 = tpu.matmul %69, %70, %cst_34 {dimension_numbers = #tpu.dot_dimension_numbers<[1], [1], [0], [0], [0, 0, 1, 0], [], []>} : vector<5x16xbf16>, vector<5x16xbf16>, vector<5x5xf32> -> vector<5x5xf32>
    %cst_35 = arith.constant 2.500000e-01 : f32
    %72 = vector.broadcast %cst_35 : f32 to vector<5x5xf32>
    %73 = arith.mulf %71, %72 : vector<5x5xf32>
    %cst_36 = arith.constant dense<0xFF800000> : vector<5xf32>
    %74 = vector.multi_reduction <maximumf>, %73, %cst_36 [1] : vector<5x5xf32> to vector<5xf32>
    %75 = vector.shape_cast %74 : vector<5xf32> to vector<5x1xf32>
    %76 = vector.broadcast %75 : vector<5x1xf32> to vector<5x5xf32>
    %77 = arith.subf %73, %76 : vector<5x5xf32>
    %78 = math.exp %77 : vector<5x5xf32>
    %cst_37 = arith.constant dense<0.000000e+00> : vector<5xf32>
    %79 = vector.multi_reduction <add>, %78, %cst_37 [1] : vector<5x5xf32> to vector<5xf32>
    %80 = vector.shape_cast %79 : vector<5xf32> to vector<5x1xf32>
    %81 = tpu.reciprocal %80 {approx = true} : vector<5x1xf32> -> vector<5x1xf32>
    %82 = vector.broadcast %81 : vector<5x1xf32> to vector<5x5xf32>
    %83 = arith.mulf %78, %82 : vector<5x5xf32>
    %84 = arith.truncf %83 : vector<5x5xf32> to vector<5x5xbf16>
    %85 = arith.truncf %68 : vector<5x16xf32> to vector<5x16xbf16>
    %cst_38 = arith.constant dense<0.000000e+00> : vector<5x16xf32>
    %86 = tpu.matmul %84, %85, %cst_38 {dimension_numbers = #tpu.dot_dimension_numbers<[1], [0], [0], [1], [0, 0, 1, 1], [], []>} : vector<5x5xbf16>, vector<5x16xbf16>, vector<5x16xf32> -> vector<5x16xf32>
    %c0_39 = arith.constant 0 : index
    %c0_40 = arith.constant 0 : index
    %c0_41 = arith.constant 0 : index
    %87 = vector.load %arg10[%c0_39, %c0_40, %c0_41] : memref<2x32x32xbf16, #tpu.memory_space<vmem>>, vector<1x16x32xbf16>
    %88 = vector.shape_cast %87 : vector<1x16x32xbf16> to vector<16x32xbf16>
    %89 = arith.truncf %86 : vector<5x16xf32> to vector<5x16xbf16>
    %cst_42 = arith.constant dense<0.000000e+00> : vector<5x32xf32>
    %90 = tpu.matmul %89, %88, %cst_42 {dimension_numbers = #tpu.dot_dimension_numbers<[1], [0], [0], [1], [0, 0, 1, 1], [], []>} : vector<5x16xbf16>, vector<16x32xbf16>, vector<5x32xf32> -> vector<5x32xf32>
    %91 = arith.addf %65, %90 : vector<5x32xf32>
    %92 = vector.extract_strided_slice %64 {offsets = [0, 16], sizes = [5, 16], strides = [1, 1]} : vector<5x96xf32> to vector<5x16xf32>
    %93 = vector.extract_strided_slice %64 {offsets = [0, 48], sizes = [5, 16], strides = [1, 1]} : vector<5x96xf32> to vector<5x16xf32>
    %94 = vector.extract_strided_slice %64 {offsets = [0, 80], sizes = [5, 16], strides = [1, 1]} : vector<5x96xf32> to vector<5x16xf32>
    %95 = arith.truncf %92 : vector<5x16xf32> to vector<5x16xbf16>
    %96 = arith.truncf %93 : vector<5x16xf32> to vector<5x16xbf16>
    %cst_43 = arith.constant dense<0.000000e+00> : vector<5x5xf32>
    %97 = tpu.matmul %95, %96, %cst_43 {dimension_numbers = #tpu.dot_dimension_numbers<[1], [1], [0], [0], [0, 0, 1, 0], [], []>} : vector<5x16xbf16>, vector<5x16xbf16>, vector<5x5xf32> -> vector<5x5xf32>
    %cst_44 = arith.constant 2.500000e-01 : f32
    %98 = vector.broadcast %cst_44 : f32 to vector<5x5xf32>
    %99 = arith.mulf %97, %98 : vector<5x5xf32>
    %cst_45 = arith.constant dense<0xFF800000> : vector<5xf32>
    %100 = vector.multi_reduction <maximumf>, %99, %cst_45 [1] : vector<5x5xf32> to vector<5xf32>
    %101 = vector.shape_cast %100 : vector<5xf32> to vector<5x1xf32>
    %102 = vector.broadcast %101 : vector<5x1xf32> to vector<5x5xf32>
    %103 = arith.subf %99, %102 : vector<5x5xf32>
    %104 = math.exp %103 : vector<5x5xf32>
    %cst_46 = arith.constant dense<0.000000e+00> : vector<5xf32>
    %105 = vector.multi_reduction <add>, %104, %cst_46 [1] : vector<5x5xf32> to vector<5xf32>
    %106 = vector.shape_cast %105 : vector<5xf32> to vector<5x1xf32>
    %107 = tpu.reciprocal %106 {approx = true} : vector<5x1xf32> -> vector<5x1xf32>
    %108 = vector.broadcast %107 : vector<5x1xf32> to vector<5x5xf32>
    %109 = arith.mulf %104, %108 : vector<5x5xf32>
    %110 = arith.truncf %109 : vector<5x5xf32> to vector<5x5xbf16>
    %111 = arith.truncf %94 : vector<5x16xf32> to vector<5x16xbf16>
    %cst_47 = arith.constant dense<0.000000e+00> : vector<5x16xf32>
    %112 = tpu.matmul %110, %111, %cst_47 {dimension_numbers = #tpu.dot_dimension_numbers<[1], [0], [0], [1], [0, 0, 1, 1], [], []>} : vector<5x5xbf16>, vector<5x16xbf16>, vector<5x16xf32> -> vector<5x16xf32>
    %c0_48 = arith.constant 0 : index
    %c16 = arith.constant 16 : index
    %c0_49 = arith.constant 0 : index
    %113 = vector.load %arg10[%c0_48, %c16, %c0_49] : memref<2x32x32xbf16, #tpu.memory_space<vmem>>, vector<1x16x32xbf16>
    %114 = vector.shape_cast %113 : vector<1x16x32xbf16> to vector<16x32xbf16>
    %115 = arith.truncf %112 : vector<5x16xf32> to vector<5x16xbf16>
    %cst_50 = arith.constant dense<0.000000e+00> : vector<5x32xf32>
    %116 = tpu.matmul %115, %114, %cst_50 {dimension_numbers = #tpu.dot_dimension_numbers<[1], [0], [0], [1], [0, 0, 1, 1], [], []>} : vector<5x16xbf16>, vector<16x32xbf16>, vector<5x32xf32> -> vector<5x32xf32>
    %117 = arith.addf %91, %116 : vector<5x32xf32>
    %118 = arith.addf %30, %117 : vector<5x32xf32>
    %c0_51 = arith.constant 0 : index
    %c0_52 = arith.constant 0 : index
    %c0_53 = arith.constant 0 : index
    %119 = vector.load %arg11[%c0_51, %c0_52, %c0_53] : memref<2x1x32xf32, #tpu.memory_space<vmem>>, vector<1x1x32xf32>
    %120 = vector.shape_cast %119 : vector<1x1x32xf32> to vector<1x32xf32>
    %121 = vector.broadcast %120 : vector<1x32xf32> to vector<5x32xf32>
    %122 = arith.addf %118, %121 : vector<5x32xf32>
    %c0_54 = arith.constant 0 : index
    %c0_55 = arith.constant 0 : index
    %c0_56 = arith.constant 0 : index
    %123 = vector.load %arg12[%c0_54, %c0_55, %c0_56] : memref<2x1x32xf32, #tpu.memory_space<vmem>>, vector<1x1x32xf32>
    %124 = vector.shape_cast %123 : vector<1x1x32xf32> to vector<1x32xf32>
    %c0_57 = arith.constant 0 : index
    %c0_58 = arith.constant 0 : index
    %c0_59 = arith.constant 0 : index
    %125 = vector.load %arg13[%c0_57, %c0_58, %c0_59] : memref<2x1x32xf32, #tpu.memory_space<vmem>>, vector<1x1x32xf32>
    %126 = vector.shape_cast %125 : vector<1x1x32xf32> to vector<1x32xf32>
    %cst_60 = arith.constant dense<0.000000e+00> : vector<5xf32>
    %127 = vector.multi_reduction <add>, %122, %cst_60 [1] : vector<5x32xf32> to vector<5xf32>
    %128 = vector.shape_cast %127 : vector<5xf32> to vector<5x1xf32>
    %cst_61 = arith.constant 3.200000e+01 : f32
    %129 = vector.broadcast %cst_61 : f32 to vector<5x1xf32>
    %130 = arith.divf %128, %129 : vector<5x1xf32>
    %131 = vector.broadcast %130 : vector<5x1xf32> to vector<5x32xf32>
    %132 = arith.subf %122, %131 : vector<5x32xf32>
    %133 = arith.mulf %132, %132 : vector<5x32xf32>
    %cst_62 = arith.constant dense<0.000000e+00> : vector<5xf32>
    %134 = vector.multi_reduction <add>, %133, %cst_62 [1] : vector<5x32xf32> to vector<5xf32>
    %135 = vector.shape_cast %134 : vector<5xf32> to vector<5x1xf32>
    %cst_63 = arith.constant 3.200000e+01 : f32
    %136 = vector.broadcast %cst_63 : f32 to vector<5x1xf32>
    %137 = arith.divf %135, %136 : vector<5x1xf32>
    %138 = vector.broadcast %130 : vector<5x1xf32> to vector<5x32xf32>
    %139 = arith.subf %122, %138 : vector<5x32xf32>
    %cst_64 = arith.constant 9.99999974E-6 : f32
    %140 = vector.broadcast %cst_64 : f32 to vector<5x1xf32>
    %141 = arith.addf %137, %140 : vector<5x1xf32>
    %142 = math.rsqrt %141 : vector<5x1xf32>
    %143 = vector.broadcast %142 : vector<5x1xf32> to vector<5x32xf32>
    %144 = arith.mulf %139, %143 : vector<5x32xf32>
    %145 = vector.broadcast %124 : vector<1x32xf32> to vector<5x32xf32>
    %146 = arith.mulf %144, %145 : vector<5x32xf32>
    %147 = vector.broadcast %126 : vector<1x32xf32> to vector<5x32xf32>
    %148 = arith.addf %146, %147 : vector<5x32xf32>
    %c0_65 = arith.constant 0 : index
    %c0_66 = arith.constant 0 : index
    %c0_67 = arith.constant 0 : index
    %149 = vector.load %arg14[%c0_65, %c0_66, %c0_67] : memref<2x32x64xbf16, #tpu.memory_space<vmem>>, vector<1x32x64xbf16>
    %150 = vector.shape_cast %149 : vector<1x32x64xbf16> to vector<32x64xbf16>
    %151 = arith.truncf %148 : vector<5x32xf32> to vector<5x32xbf16>
    %cst_68 = arith.constant dense<0.000000e+00> : vector<5x64xf32>
    %152 = tpu.matmul %151, %150, %cst_68 {dimension_numbers = #tpu.dot_dimension_numbers<[1], [0], [0], [1], [0, 0, 1, 1], [], []>} : vector<5x32xbf16>, vector<32x64xbf16>, vector<5x64xf32> -> vector<5x64xf32>
    %c0_69 = arith.constant 0 : index
    %c0_70 = arith.constant 0 : index
    %c0_71 = arith.constant 0 : index
    %153 = vector.load %arg15[%c0_69, %c0_70, %c0_71] : memref<2x1x64xf32, #tpu.memory_space<vmem>>, vector<1x1x64xf32>
    %154 = vector.shape_cast %153 : vector<1x1x64xf32> to vector<1x64xf32>
    %155 = vector.broadcast %154 : vector<1x64xf32> to vector<5x64xf32>
    %156 = arith.addf %152, %155 : vector<5x64xf32>
    %cst_72 = arith.constant 1.702000e+00 : f32
    %157 = vector.broadcast %cst_72 : f32 to vector<5x64xf32>
    %158 = arith.mulf %157, %156 : vector<5x64xf32>
    %159 = arith.negf %158 : vector<5x64xf32>
    %160 = math.exp %159 : vector<5x64xf32>
    %cst_73 = arith.constant 1.000000e+00 : f32
    %161 = vector.broadcast %cst_73 : f32 to vector<5x64xf32>
    %162 = arith.addf %161, %160 : vector<5x64xf32>
    %163 = arith.divf %161, %162 : vector<5x64xf32>
    %164 = arith.mulf %156, %163 : vector<5x64xf32>
    %c0_74 = arith.constant 0 : index
    %c0_75 = arith.constant 0 : index
    %c0_76 = arith.constant 0 : index
    %165 = vector.load %arg16[%c0_74, %c0_75, %c0_76] : memref<2x64x32xbf16, #tpu.memory_space<vmem>>, vector<1x64x32xbf16>
    %166 = vector.shape_cast %165 : vector<1x64x32xbf16> to vector<64x32xbf16>
    %167 = arith.truncf %164 : vector<5x64xf32> to vector<5x64xbf16>
    %cst_77 = arith.constant dense<0.000000e+00> : vector<5x32xf32>
    %168 = tpu.matmul %167, %166, %cst_77 {dimension_numbers = #tpu.dot_dimension_numbers<[1], [0], [0], [1], [0, 0, 1, 1], [], []>} : vector<5x64xbf16>, vector<64x32xbf16>, vector<5x32xf32> -> vector<5x32xf32>
    %c0_78 = arith.constant 0 : index
    %c0_79 = arith.constant 0 : index
    %c0_80 = arith.constant 0 : index
    %169 = vector.load %arg17[%c0_78, %c0_79, %c0_80] : memref<2x1x32xf32, #tpu.memory_space<vmem>>, vector<1x1x32xf32>
    %170 = vector.shape_cast %169 : vector<1x1x32xf32> to vector<1x32xf32>
    %171 = vector.broadcast %170 : vector<1x32xf32> to vector<5x32xf32>
    %172 = arith.addf %168, %171 : vector<5x32xf32>
    %173 = arith.addf %122, %172 : vector<5x32xf32>
    %c1 = arith.constant 1 : index
    %c0_81 = arith.constant 0 : index
    %c0_82 = arith.constant 0 : index
    %174 = vector.load %arg6[%c1, %c0_81, %c0_82] : memref<2x1x32xf32, #tpu.memory_space<vmem>>, vector<1x1x32xf32>
    %175 = vector.shape_cast %174 : vector<1x1x32xf32> to vector<1x32xf32>
    %c1_83 = arith.constant 1 : index
    %c0_84 = arith.constant 0 : index
    %c0_85 = arith.constant 0 : index
    %176 = vector.load %arg7[%c1_83, %c0_84, %c0_85] : memref<2x1x32xf32, #tpu.memory_space<vmem>>, vector<1x1x32xf32>
    %177 = vector.shape_cast %176 : vector<1x1x32xf32> to vector<1x32xf32>
    %cst_86 = arith.constant dense<0.000000e+00> : vector<5xf32>
    %178 = vector.multi_reduction <add>, %173, %cst_86 [1] : vector<5x32xf32> to vector<5xf32>
    %179 = vector.shape_cast %178 : vector<5xf32> to vector<5x1xf32>
    %cst_87 = arith.constant 3.200000e+01 : f32
    %180 = vector.broadcast %cst_87 : f32 to vector<5x1xf32>
    %181 = arith.divf %179, %180 : vector<5x1xf32>
    %182 = vector.broadcast %181 : vector<5x1xf32> to vector<5x32xf32>
    %183 = arith.subf %173, %182 : vector<5x32xf32>
    %184 = arith.mulf %183, %183 : vector<5x32xf32>
    %cst_88 = arith.constant dense<0.000000e+00> : vector<5xf32>
    %185 = vector.multi_reduction <add>, %184, %cst_88 [1] : vector<5x32xf32> to vector<5xf32>
    %186 = vector.shape_cast %185 : vector<5xf32> to vector<5x1xf32>
    %cst_89 = arith.constant 3.200000e+01 : f32
    %187 = vector.broadcast %cst_89 : f32 to vector<5x1xf32>
    %188 = arith.divf %186, %187 : vector<5x1xf32>
    %189 = vector.broadcast %181 : vector<5x1xf32> to vector<5x32xf32>
    %190 = arith.subf %173, %189 : vector<5x32xf32>
    %cst_90 = arith.constant 9.99999974E-6 : f32
    %191 = vector.broadcast %cst_90 : f32 to vector<5x1xf32>
    %192 = arith.addf %188, %191 : vector<5x1xf32>
    %193 = math.rsqrt %192 : vector<5x1xf32>
    %194 = vector.broadcast %193 : vector<5x1xf32> to vector<5x32xf32>
    %195 = arith.mulf %190, %194 : vector<5x32xf32>
    %196 = vector.broadcast %175 : vector<1x32xf32> to vector<5x32xf32>
    %197 = arith.mulf %195, %196 : vector<5x32xf32>
    %198 = vector.broadcast %177 : vector<1x32xf32> to vector<5x32xf32>
    %199 = arith.addf %197, %198 : vector<5x32xf32>
    %c1_91 = arith.constant 1 : index
    %c0_92 = arith.constant 0 : index
    %c0_93 = arith.constant 0 : index
    %200 = vector.load %arg8[%c1_91, %c0_92, %c0_93] : memref<2x32x96xbf16, #tpu.memory_space<vmem>>, vector<1x32x96xbf16>
    %201 = vector.shape_cast %200 : vector<1x32x96xbf16> to vector<32x96xbf16>
    %202 = arith.truncf %199 : vector<5x32xf32> to vector<5x32xbf16>
    %cst_94 = arith.constant dense<0.000000e+00> : vector<5x96xf32>
    %203 = tpu.matmul %202, %201, %cst_94 {dimension_numbers = #tpu.dot_dimension_numbers<[1], [0], [0], [1], [0, 0, 1, 1], [], []>} : vector<5x32xbf16>, vector<32x96xbf16>, vector<5x96xf32> -> vector<5x96xf32>
    %c1_95 = arith.constant 1 : index
    %c0_96 = arith.constant 0 : index
    %c0_97 = arith.constant 0 : index
    %204 = vector.load %arg9[%c1_95, %c0_96, %c0_97] : memref<2x1x96xf32, #tpu.memory_space<vmem>>, vector<1x1x96xf32>
    %205 = vector.shape_cast %204 : vector<1x1x96xf32> to vector<1x96xf32>
    %206 = vector.broadcast %205 : vector<1x96xf32> to vector<5x96xf32>
    %207 = arith.addf %203, %206 : vector<5x96xf32>
    %cst_98 = arith.constant 0.000000e+00 : f32
    %208 = vector.broadcast %cst_98 : f32 to vector<5x32xf32>
    %209 = vector.extract_strided_slice %207 {offsets = [0, 0], sizes = [5, 16], strides = [1, 1]} : vector<5x96xf32> to vector<5x16xf32>
    %210 = vector.extract_strided_slice %207 {offsets = [0, 32], sizes = [5, 16], strides = [1, 1]} : vector<5x96xf32> to vector<5x16xf32>
    %211 = vector.extract_strided_slice %207 {offsets = [0, 64], sizes = [5, 16], strides = [1, 1]} : vector<5x96xf32> to vector<5x16xf32>
    %212 = arith.truncf %209 : vector<5x16xf32> to vector<5x16xbf16>
    %213 = arith.truncf %210 : vector<5x16xf32> to vector<5x16xbf16>
    %cst_99 = arith.constant dense<0.000000e+00> : vector<5x5xf32>
    %214 = tpu.matmul %212, %213, %cst_99 {dimension_numbers = #tpu.dot_dimension_numbers<[1], [1], [0], [0], [0, 0, 1, 0], [], []>} : vector<5x16xbf16>, vector<5x16xbf16>, vector<5x5xf32> -> vector<5x5xf32>
    %cst_100 = arith.constant 2.500000e-01 : f32
    %215 = vector.broadcast %cst_100 : f32 to vector<5x5xf32>
    %216 = arith.mulf %214, %215 : vector<5x5xf32>
    %cst_101 = arith.constant dense<0xFF800000> : vector<5xf32>
    %217 = vector.multi_reduction <maximumf>, %216, %cst_101 [1] : vector<5x5xf32> to vector<5xf32>
    %218 = vector.shape_cast %217 : vector<5xf32> to vector<5x1xf32>
    %219 = vector.broadcast %218 : vector<5x1xf32> to vector<5x5xf32>
    %220 = arith.subf %216, %219 : vector<5x5xf32>
    %221 = math.exp %220 : vector<5x5xf32>
    %cst_102 = arith.constant dense<0.000000e+00> : vector<5xf32>
    %222 = vector.multi_reduction <add>, %221, %cst_102 [1] : vector<5x5xf32> to vector<5xf32>
    %223 = vector.shape_cast %222 : vector<5xf32> to vector<5x1xf32>
    %224 = tpu.reciprocal %223 {approx = true} : vector<5x1xf32> -> vector<5x1xf32>
    %225 = vector.broadcast %224 : vector<5x1xf32> to vector<5x5xf32>
    %226 = arith.mulf %221, %225 : vector<5x5xf32>
    %227 = arith.truncf %226 : vector<5x5xf32> to vector<5x5xbf16>
    %228 = arith.truncf %211 : vector<5x16xf32> to vector<5x16xbf16>
    %cst_103 = arith.constant dense<0.000000e+00> : vector<5x16xf32>
    %229 = tpu.matmul %227, %228, %cst_103 {dimension_numbers = #tpu.dot_dimension_numbers<[1], [0], [0], [1], [0, 0, 1, 1], [], []>} : vector<5x5xbf16>, vector<5x16xbf16>, vector<5x16xf32> -> vector<5x16xf32>
    %c1_104 = arith.constant 1 : index
    %c0_105 = arith.constant 0 : index
    %c0_106 = arith.constant 0 : index
    %230 = vector.load %arg10[%c1_104, %c0_105, %c0_106] : memref<2x32x32xbf16, #tpu.memory_space<vmem>>, vector<1x16x32xbf16>
    %231 = vector.shape_cast %230 : vector<1x16x32xbf16> to vector<16x32xbf16>
    %232 = arith.truncf %229 : vector<5x16xf32> to vector<5x16xbf16>
    %cst_107 = arith.constant dense<0.000000e+00> : vector<5x32xf32>
    %233 = tpu.matmul %232, %231, %cst_107 {dimension_numbers = #tpu.dot_dimension_numbers<[1], [0], [0], [1], [0, 0, 1, 1], [], []>} : vector<5x16xbf16>, vector<16x32xbf16>, vector<5x32xf32> -> vector<5x32xf32>
    %234 = arith.addf %208, %233 : vector<5x32xf32>
    %235 = vector.extract_strided_slice %207 {offsets = [0, 16], sizes = [5, 16], strides = [1, 1]} : vector<5x96xf32> to vector<5x16xf32>
    %236 = vector.extract_strided_slice %207 {offsets = [0, 48], sizes = [5, 16], strides = [1, 1]} : vector<5x96xf32> to vector<5x16xf32>
    %237 = vector.extract_strided_slice %207 {offsets = [0, 80], sizes = [5, 16], strides = [1, 1]} : vector<5x96xf32> to vector<5x16xf32>
    %238 = arith.truncf %235 : vector<5x16xf32> to vector<5x16xbf16>
    %239 = arith.truncf %236 : vector<5x16xf32> to vector<5x16xbf16>
    %cst_108 = arith.constant dense<0.000000e+00> : vector<5x5xf32>
    %240 = tpu.matmul %238, %239, %cst_108 {dimension_numbers = #tpu.dot_dimension_numbers<[1], [1], [0], [0], [0, 0, 1, 0], [], []>} : vector<5x16xbf16>, vector<5x16xbf16>, vector<5x5xf32> -> vector<5x5xf32>
    %cst_109 = arith.constant 2.500000e-01 : f32
    %241 = vector.broadcast %cst_109 : f32 to vector<5x5xf32>
    %242 = arith.mulf %240, %241 : vector<5x5xf32>
    %cst_110 = arith.constant dense<0xFF800000> : vector<5xf32>
    %243 = vector.multi_reduction <maximumf>, %242, %cst_110 [1] : vector<5x5xf32> to vector<5xf32>
    %244 = vector.shape_cast %243 : vector<5xf32> to vector<5x1xf32>
    %245 = vector.broadcast %244 : vector<5x1xf32> to vector<5x5xf32>
    %246 = arith.subf %242, %245 : vector<5x5xf32>
    %247 = math.exp %246 : vector<5x5xf32>
    %cst_111 = arith.constant dense<0.000000e+00> : vector<5xf32>
    %248 = vector.multi_reduction <add>, %247, %cst_111 [1] : vector<5x5xf32> to vector<5xf32>
    %249 = vector.shape_cast %248 : vector<5xf32> to vector<5x1xf32>
    %250 = tpu.reciprocal %249 {approx = true} : vector<5x1xf32> -> vector<5x1xf32>
    %251 = vector.broadcast %250 : vector<5x1xf32> to vector<5x5xf32>
    %252 = arith.mulf %247, %251 : vector<5x5xf32>
    %253 = arith.truncf %252 : vector<5x5xf32> to vector<5x5xbf16>
    %254 = arith.truncf %237 : vector<5x16xf32> to vector<5x16xbf16>
    %cst_112 = arith.constant dense<0.000000e+00> : vector<5x16xf32>
    %255 = tpu.matmul %253, %254, %cst_112 {dimension_numbers = #tpu.dot_dimension_numbers<[1], [0], [0], [1], [0, 0, 1, 1], [], []>} : vector<5x5xbf16>, vector<5x16xbf16>, vector<5x16xf32> -> vector<5x16xf32>
    %c1_113 = arith.constant 1 : index
    %c16_114 = arith.constant 16 : index
    %c0_115 = arith.constant 0 : index
    %256 = vector.load %arg10[%c1_113, %c16_114, %c0_115] : memref<2x32x32xbf16, #tpu.memory_space<vmem>>, vector<1x16x32xbf16>
    %257 = vector.shape_cast %256 : vector<1x16x32xbf16> to vector<16x32xbf16>
    %258 = arith.truncf %255 : vector<5x16xf32> to vector<5x16xbf16>
    %cst_116 = arith.constant dense<0.000000e+00> : vector<5x32xf32>
    %259 = tpu.matmul %258, %257, %cst_116 {dimension_numbers = #tpu.dot_dimension_numbers<[1], [0], [0], [1], [0, 0, 1, 1], [], []>} : vector<5x16xbf16>, vector<16x32xbf16>, vector<5x32xf32> -> vector<5x32xf32>
    %260 = arith.addf %234, %259 : vector<5x32xf32>
    %261 = arith.addf %173, %260 : vector<5x32xf32>
    %c1_117 = arith.constant 1 : index
    %c0_118 = arith.constant 0 : index
    %c0_119 = arith.constant 0 : index
    %262 = vector.load %arg11[%c1_117, %c0_118, %c0_119] : memref<2x1x32xf32, #tpu.memory_space<vmem>>, vector<1x1x32xf32>
    %263 = vector.shape_cast %262 : vector<1x1x32xf32> to vector<1x32xf32>
    %264 = vector.broadcast %263 : vector<1x32xf32> to vector<5x32xf32>
    %265 = arith.addf %261, %264 : vector<5x32xf32>
    %c1_120 = arith.constant 1 : index
    %c0_121 = arith.constant 0 : index
    %c0_122 = arith.constant 0 : index
    %266 = vector.load %arg12[%c1_120, %c0_121, %c0_122] : memref<2x1x32xf32, #tpu.memory_space<vmem>>, vector<1x1x32xf32>
    %267 = vector.shape_cast %266 : vector<1x1x32xf32> to vector<1x32xf32>
    %c1_123 = arith.constant 1 : index
    %c0_124 = arith.constant 0 : index
    %c0_125 = arith.constant 0 : index
    %268 = vector.load %arg13[%c1_123, %c0_124, %c0_125] : memref<2x1x32xf32, #tpu.memory_space<vmem>>, vector<1x1x32xf32>
    %269 = vector.shape_cast %268 : vector<1x1x32xf32> to vector<1x32xf32>
    %cst_126 = arith.constant dense<0.000000e+00> : vector<5xf32>
    %270 = vector.multi_reduction <add>, %265, %cst_126 [1] : vector<5x32xf32> to vector<5xf32>
    %271 = vector.shape_cast %270 : vector<5xf32> to vector<5x1xf32>
    %cst_127 = arith.constant 3.200000e+01 : f32
    %272 = vector.broadcast %cst_127 : f32 to vector<5x1xf32>
    %273 = arith.divf %271, %272 : vector<5x1xf32>
    %274 = vector.broadcast %273 : vector<5x1xf32> to vector<5x32xf32>
    %275 = arith.subf %265, %274 : vector<5x32xf32>
    %276 = arith.mulf %275, %275 : vector<5x32xf32>
    %cst_128 = arith.constant dense<0.000000e+00> : vector<5xf32>
    %277 = vector.multi_reduction <add>, %276, %cst_128 [1] : vector<5x32xf32> to vector<5xf32>
    %278 = vector.shape_cast %277 : vector<5xf32> to vector<5x1xf32>
    %cst_129 = arith.constant 3.200000e+01 : f32
    %279 = vector.broadcast %cst_129 : f32 to vector<5x1xf32>
    %280 = arith.divf %278, %279 : vector<5x1xf32>
    %281 = vector.broadcast %273 : vector<5x1xf32> to vector<5x32xf32>
    %282 = arith.subf %265, %281 : vector<5x32xf32>
    %cst_130 = arith.constant 9.99999974E-6 : f32
    %283 = vector.broadcast %cst_130 : f32 to vector<5x1xf32>
    %284 = arith.addf %280, %283 : vector<5x1xf32>
    %285 = math.rsqrt %284 : vector<5x1xf32>
    %286 = vector.broadcast %285 : vector<5x1xf32> to vector<5x32xf32>
    %287 = arith.mulf %282, %286 : vector<5x32xf32>
    %288 = vector.broadcast %267 : vector<1x32xf32> to vector<5x32xf32>
    %289 = arith.mulf %287, %288 : vector<5x32xf32>
    %290 = vector.broadcast %269 : vector<1x32xf32> to vector<5x32xf32>
    %291 = arith.addf %289, %290 : vector<5x32xf32>
    %c1_131 = arith.constant 1 : index
    %c0_132 = arith.constant 0 : index
    %c0_133 = arith.constant 0 : index
    %292 = vector.load %arg14[%c1_131, %c0_132, %c0_133] : memref<2x32x64xbf16, #tpu.memory_space<vmem>>, vector<1x32x64xbf16>
    %293 = vector.shape_cast %292 : vector<1x32x64xbf16> to vector<32x64xbf16>
    %294 = arith.truncf %291 : vector<5x32xf32> to vector<5x32xbf16>
    %cst_134 = arith.constant dense<0.000000e+00> : vector<5x64xf32>
    %295 = tpu.matmul %294, %293, %cst_134 {dimension_numbers = #tpu.dot_dimension_numbers<[1], [0], [0], [1], [0, 0, 1, 1], [], []>} : vector<5x32xbf16>, vector<32x64xbf16>, vector<5x64xf32> -> vector<5x64xf32>
    %c1_135 = arith.constant 1 : index
    %c0_136 = arith.constant 0 : index
    %c0_137 = arith.constant 0 : index
    %296 = vector.load %arg15[%c1_135, %c0_136, %c0_137] : memref<2x1x64xf32, #tpu.memory_space<vmem>>, vector<1x1x64xf32>
    %297 = vector.shape_cast %296 : vector<1x1x64xf32> to vector<1x64xf32>
    %298 = vector.broadcast %297 : vector<1x64xf32> to vector<5x64xf32>
    %299 = arith.addf %295, %298 : vector<5x64xf32>
    %cst_138 = arith.constant 1.702000e+00 : f32
    %300 = vector.broadcast %cst_138 : f32 to vector<5x64xf32>
    %301 = arith.mulf %300, %299 : vector<5x64xf32>
    %302 = arith.negf %301 : vector<5x64xf32>
    %303 = math.exp %302 : vector<5x64xf32>
    %cst_139 = arith.constant 1.000000e+00 : f32
    %304 = vector.broadcast %cst_139 : f32 to vector<5x64xf32>
    %305 = arith.addf %304, %303 : vector<5x64xf32>
    %306 = arith.divf %304, %305 : vector<5x64xf32>
    %307 = arith.mulf %299, %306 : vector<5x64xf32>
    %c1_140 = arith.constant 1 : index
    %c0_141 = arith.constant 0 : index
    %c0_142 = arith.constant 0 : index
    %308 = vector.load %arg16[%c1_140, %c0_141, %c0_142] : memref<2x64x32xbf16, #tpu.memory_space<vmem>>, vector<1x64x32xbf16>
    %309 = vector.shape_cast %308 : vector<1x64x32xbf16> to vector<64x32xbf16>
    %310 = arith.truncf %307 : vector<5x64xf32> to vector<5x64xbf16>
    %cst_143 = arith.constant dense<0.000000e+00> : vector<5x32xf32>
    %311 = tpu.matmul %310, %309, %cst_143 {dimension_numbers = #tpu.dot_dimension_numbers<[1], [0], [0], [1], [0, 0, 1, 1], [], []>} : vector<5x64xbf16>, vector<64x32xbf16>, vector<5x32xf32> -> vector<5x32xf32>
    %c1_144 = arith.constant 1 : index
    %c0_145 = arith.constant 0 : index
    %c0_146 = arith.constant 0 : index
    %312 = vector.load %arg17[%c1_144, %c0_145, %c0_146] : memref<2x1x32xf32, #tpu.memory_space<vmem>>, vector<1x1x32xf32>
    %313 = vector.shape_cast %312 : vector<1x1x32xf32> to vector<1x32xf32>
    %314 = vector.broadcast %313 : vector<1x32xf32> to vector<5x32xf32>
    %315 = arith.addf %311, %314 : vector<5x32xf32>
    %316 = arith.addf %265, %315 : vector<5x32xf32>
    %317 = vector.extract_strided_slice %316 {offsets = [0, 0], sizes = [1, 32], strides = [1, 1]} : vector<5x32xf32> to vector<1x32xf32>
    %c0_147 = arith.constant 0 : index
    %c0_148 = arith.constant 0 : index
    %c0_149 = arith.constant 0 : index
    %318 = vector.load %arg18[%c0_147, %c0_148, %c0_149] : memref<1x1x32xf32, #tpu.memory_space<vmem>>, vector<1x1x32xf32>
    %319 = vector.shape_cast %318 : vector<1x1x32xf32> to vector<1x32xf32>
    %320 = vector.shape_cast %317 : vector<1x32xf32> to vector<1x1x32xf32>
    tpu.vector_store %arg18[%c0_147, %c0_148, %c0_149], %320 {strides = array<i32>} : memref<1x1x32xf32, #tpu.memory_space<vmem>>, vector<1x1x32xf32>,
    return
  }
  func.func @transform_0(%arg0: i32) -> (i32, i32, i32) {
    %c0_i32 = arith.constant 0 : i32
    %c0_i32_0 = arith.constant 0 : i32
    %c0_i32_1 = arith.constant 0 : i32
    return %arg0, %c0_i32, %c0_i32_0 : i32, i32, i32
  }
  func.func @transform_1(%arg0: i32) -> (i32, i32) {
    %c0_i32 = arith.constant 0 : i32
    %c0_i32_0 = arith.constant 0 : i32
    %c0_i32_1 = arith.constant 0 : i32
    return %c0_i32, %c0_i32_0 : i32, i32
  }
  func.func @transform_2(%arg0: i32) -> (i32, i32) {
    %c0_i32 = arith.constant 0 : i32
    %c0_i32_0 = arith.constant 0 : i32
    %c0_i32_1 = arith.constant 0 : i32
    return %c0_i32, %c0_i32_0 : i32, i32
  }
  func.func @transform_3(%arg0: i32) -> (i32, i32) {
    %c0_i32 = arith.constant 0 : i32
    %c0_i32_0 = arith.constant 0 : i32
    %c0_i32_1 = arith.constant 0 : i32
    return %c0_i32, %c0_i32_0 : i32, i32
  }
  func.func @transform_4(%arg0: i32) -> (i32, i32) {
    %c0_i32 = arith.constant 0 : i32
    %c0_i32_0 = arith.constant 0 : i32
    %c0_i32_1 = arith.constant 0 : i32
    return %c0_i32, %c0_i32_0 : i32, i32
  }
  func.func @transform_5(%arg0: i32) -> (i32, i32, i32) {
    %c0_i32 = arith.constant 0 : i32
    %c0_i32_0 = arith.constant 0 : i32
    %c0_i32_1 = arith.constant 0 : i32
    %c0_i32_2 = arith.constant 0 : i32
    return %c0_i32, %c0_i32_0, %c0_i32_1 : i32, i32, i32
  }
  func.func @transform_6(%arg0: i32) -> (i32, i32, i32) {
    %c0_i32 = arith.constant 0 : i32
    %c0_i32_0 = arith.constant 0 : i32
    %c0_i32_1 = arith.constant 0 : i32
    %c0_i32_2 = arith.constant 0 : i32
    return %c0_i32, %c0_i32_0, %c0_i32_1 : i32, i32, i32
  }
  func.func @transform_7(%arg0: i32) -> (i32, i32, i32) {
    %c0_i32 = arith.constant 0 : i32
    %c0_i32_0 = arith.constant 0 : i32
    %c0_i32_1 = arith.constant 0 : i32
    %c0_i32_2 = arith.constant 0 : i32
    return %c0_i32, %c0_i32_0, %c0_i32_1 : i32, i32, i32
  }
  func.func @transform_8(%arg0: i32) -> (i32, i32, i32) {
    %c0_i32 = arith.constant 0 : i32
    %c0_i32_0 = arith.constant 0 : i32
    %c0_i32_1 = arith.constant 0 : i32
    %c0_i32_2 = arith.constant 0 : i32
    return %c0_i32, %c0_i32_0, %c0_i32_1 : i32, i32, i32
  }
  func.func @transform_9(%arg0: i32) -> (i32, i32, i32) {
    %c0_i32 = arith.constant 0 : i32
    %c0_i32_0 = arith.constant 0 : i32
    %c0_i32_1 = arith.constant 0 : i32
    %c0_i32_2 = arith.constant 0 : i32
    return %c0_i32, %c0_i32_0, %c0_i32_1 : i32, i32, i32
  }
  func.func @transform_10(%arg0: i32) -> (i32, i32, i32) {
    %c0_i32 = arith.constant 0 : i32
    %c0_i32_0 = arith.constant 0 : i32
    %c0_i32_1 = arith.constant 0 : i32
    %c0_i32_2 = arith.constant 0 : i32
    return %c0_i32, %c0_i32_0, %c0_i32_1 : i32, i32, i32
  }
  func.func @transform_11(%arg0: i32) -> (i32, i32, i32) {
    %c0_i32 = arith.constant 0 : i32
    %c0_i32_0 = arith.constant 0 : i32
    %c0_i32_1 = arith.constant 0 : i32
    %c0_i32_2 = arith.constant 0 : i32
    return %c0_i32, %c0_i32_0, %c0_i32_1 : i32, i32, i32
  }
  func.func @transform_12(%arg0: i32) -> (i32, i32, i32) {
    %c0_i32 = arith.constant 0 : i32
    %c0_i32_0 = arith.constant 0 : i32
    %c0_i32_1 = arith.constant 0 : i32
    %c0_i32_2 = arith.constant 0 : i32
    return %c0_i32, %c0_i32_0, %c0_i32_1 : i32, i32, i32
  }
  func.func @transform_13(%arg0: i32) -> (i32, i32, i32) {
    %c0_i32 = arith.constant 0 : i32
    %c0_i32_0 = arith.constant 0 : i32
    %c0_i32_1 = arith.constant 0 : i32
    %c0_i32_2 = arith.constant 0 : i32
    return %c0_i32, %c0_i32_0, %c0_i32_1 : i32, i32, i32
  }
  func.func @transform_14(%arg0: i32) -> (i32, i32, i32) {
    %c0_i32 = arith.constant 0 : i32
    %c0_i32_0 = arith.constant 0 : i32
    %c0_i32_1 = arith.constant 0 : i32
    %c0_i32_2 = arith.constant 0 : i32
    return %c0_i32, %c0_i32_0, %c0_i32_1 : i32, i32, i32
  }
  func.func @transform_15(%arg0: i32) -> (i32, i32, i32) {
    %c0_i32 = arith.constant 0 : i32
    %c0_i32_0 = arith.constant 0 : i32
    %c0_i32_1 = arith.constant 0 : i32
    %c0_i32_2 = arith.constant 0 : i32
    return %c0_i32, %c0_i32_0, %c0_i32_1 : i32, i32, i32
  }
  func.func @transform_16(%arg0: i32) -> (i32, i32, i32) {
    %c0_i32 = arith.constant 0 : i32
    %c0_i32_0 = arith.constant 0 : i32
    %c0_i32_1 = arith.constant 0 : i32
    %c0_i32_2 = arith.constant 0 : i32
    return %c0_i32, %c0_i32_0, %c0_i32_1 : i32, i32, i32
  }
  func.func @transform_17(%arg0: i32) -> (i32, i32, i32) {
    %c0_i32 = arith.constant 0 : i32
    %c0_i32_0 = arith.constant 0 : i32
    %c0_i32_1 = arith.constant 0 : i32
    return %arg0, %c0_i32, %c0_i32_0 : i32, i32, i32
  }
}

module attributes {stable_mosaic.version = 11 : i64} {
  func.func @_head_kernel(%arg0: i32, %arg1: memref<1x2x32xf32, #tpu.memory_space<vmem>>, %arg2: memref<32x256xbf16, #tpu.memory_space<vmem>>, %arg3: memref<1x256xf32, #tpu.memory_space<vmem>>, %arg4: memref<256x5xbf16, #tpu.memory_space<vmem>>, %arg5: memref<1x5xf32, #tpu.memory_space<vmem>>, %arg6: memref<1x1x5xf32, #tpu.memory_space<vmem>>) attributes {dimension_semantics = [#tpu.dimension_semantics<parallel>], iteration_bounds = array<i64: 2>, scalar_prefetch = 0 : i64, scratch_operands = 0 : i64, tpu.core_type = #tpu.core_type<tc>, window_params = [{transform_indices = @transform_0, window_bounds = array<i64: 1, 2, 32>}, {pipeline_mode = #tpu.pipeline_mode<synchronous>, transform_indices = @transform_1, window_bounds = array<i64: 32, 256>}, {pipeline_mode = #tpu.pipeline_mode<synchronous>, transform_indices = @transform_2, window_bounds = array<i64: 1, 256>}, {pipeline_mode = #tpu.pipeline_mode<synchronous>, transform_indices = @transform_3, window_bounds = array<i64: 256, 5>}, {pipeline_mode = #tpu.pipeline_mode<synchronous>, transform_indices = @transform_4, window_bounds = array<i64: 1, 5>}, {transform_indices = @transform_5, window_bounds = array<i64: 1, 1, 5>}]} {
    %c0 = arith.constant 0 : index
    %c0_0 = arith.constant 0 : index
    %c0_1 = arith.constant 0 : index
    %0 = vector.load %arg1[%c0, %c0_0, %c0_1] : memref<1x2x32xf32, #tpu.memory_space<vmem>>, vector<1x2x32xf32>
    %1 = vector.shape_cast %0 : vector<1x2x32xf32> to vector<2x32xf32>
    %cst = arith.constant dense<0.000000e+00> : vector<32xf32>
    %2 = vector.multi_reduction <add>, %1, %cst [0] : vector<2x32xf32> to vector<32xf32>
    %3 = vector.shape_cast %2 : vector<32xf32> to vector<1x32xf32>
    %cst_2 = arith.constant 5.000000e-01 : f32
    %4 = vector.broadcast %cst_2 : f32 to vector<1x32xf32>
    %5 = arith.mulf %3, %4 : vector<1x32xf32>
    %6 = arith.truncf %5 : vector<1x32xf32> to vector<1x32xbf16>
    %c0_3 = arith.constant 0 : index
    %c0_4 = arith.constant 0 : index
    %7 = vector.load %arg2[%c0_3, %c0_4] : memref<32x256xbf16, #tpu.memory_space<vmem>>, vector<32x256xbf16>
    %cst_5 = arith.constant dense<0.000000e+00> : vector<1x256xf32>
    %8 = tpu.matmul %6, %7, %cst_5 {dimension_numbers = #tpu.dot_dimension_numbers<[1], [0], [0], [1], [0, 0, 1, 1], [], []>} : vector<1x32xbf16>, vector<32x256xbf16>, vector<1x256xf32> -> vector<1x256xf32>
    %c0_6 = arith.constant 0 : index
    %c0_7 = arith.constant 0 : index
    %9 = vector.load %arg3[%c0_6, %c0_7] : memref<1x256xf32, #tpu.memory_space<vmem>>, vector<1x256xf32>
    %10 = arith.addf %8, %9 : vector<1x256xf32>
    %cst_8 = arith.constant 0.000000e+00 : f32
    %11 = vector.broadcast %cst_8 : f32 to vector<1x256xf32>
    %12 = arith.maximumf %10, %11 : vector<1x256xf32>
    %13 = arith.truncf %12 : vector<1x256xf32> to vector<1x256xbf16>
    %c0_9 = arith.constant 0 : index
    %c0_10 = arith.constant 0 : index
    %14 = vector.load %arg4[%c0_9, %c0_10] : memref<256x5xbf16, #tpu.memory_space<vmem>>, vector<256x5xbf16>
    %cst_11 = arith.constant dense<0.000000e+00> : vector<1x5xf32>
    %15 = tpu.matmul %13, %14, %cst_11 {dimension_numbers = #tpu.dot_dimension_numbers<[1], [0], [0], [1], [0, 0, 1, 1], [], []>} : vector<1x256xbf16>, vector<256x5xbf16>, vector<1x5xf32> -> vector<1x5xf32>
    %c0_12 = arith.constant 0 : index
    %c0_13 = arith.constant 0 : index
    %16 = vector.load %arg5[%c0_12, %c0_13] : memref<1x5xf32, #tpu.memory_space<vmem>>, vector<1x5xf32>
    %17 = arith.addf %15, %16 : vector<1x5xf32>
    %c0_14 = arith.constant 0 : index
    %c0_15 = arith.constant 0 : index
    %c0_16 = arith.constant 0 : index
    %18 = vector.load %arg6[%c0_14, %c0_15, %c0_16] : memref<1x1x5xf32, #tpu.memory_space<vmem>>, vector<1x1x5xf32>
    %19 = vector.shape_cast %18 : vector<1x1x5xf32> to vector<1x5xf32>
    %20 = vector.shape_cast %17 : vector<1x5xf32> to vector<1x1x5xf32>
    tpu.vector_store %arg6[%c0_14, %c0_15, %c0_16], %20 {strides = array<i32>} : memref<1x1x5xf32, #tpu.memory_space<vmem>>, vector<1x1x5xf32>,
    return
  }
  func.func @transform_0(%arg0: i32) -> (i32, i32, i32) {
    %c0_i32 = arith.constant 0 : i32
    %c0_i32_0 = arith.constant 0 : i32
    %c0_i32_1 = arith.constant 0 : i32
    return %arg0, %c0_i32, %c0_i32_0 : i32, i32, i32
  }
  func.func @transform_1(%arg0: i32) -> (i32, i32) {
    %c0_i32 = arith.constant 0 : i32
    %c0_i32_0 = arith.constant 0 : i32
    %c0_i32_1 = arith.constant 0 : i32
    return %c0_i32, %c0_i32_0 : i32, i32
  }
  func.func @transform_2(%arg0: i32) -> (i32, i32) {
    %c0_i32 = arith.constant 0 : i32
    %c0_i32_0 = arith.constant 0 : i32
    %c0_i32_1 = arith.constant 0 : i32
    return %c0_i32, %c0_i32_0 : i32, i32
  }
  func.func @transform_3(%arg0: i32) -> (i32, i32) {
    %c0_i32 = arith.constant 0 : i32
    %c0_i32_0 = arith.constant 0 : i32
    %c0_i32_1 = arith.constant 0 : i32
    return %c0_i32, %c0_i32_0 : i32, i32
  }
  func.func @transform_4(%arg0: i32) -> (i32, i32) {
    %c0_i32 = arith.constant 0 : i32
    %c0_i32_0 = arith.constant 0 : i32
    %c0_i32_1 = arith.constant 0 : i32
    return %c0_i32, %c0_i32_0 : i32, i32
  }
  func.func @transform_5(%arg0: i32) -> (i32, i32, i32) {
    %c0_i32 = arith.constant 0 : i32
    %c0_i32_0 = arith.constant 0 : i32
    %c0_i32_1 = arith.constant 0 : i32
    return %arg0, %c0_i32, %c0_i32_0 : i32, i32, i32
  }
}

</mosaic_0001>

<bundles_post_ra>
// kernel: vision_model_forward.3
= control target key start
LH: loop header
LB: loop body
LE: loop exit
PB: predicated region body
PF: predicated region fallthrough
CT: control target
= control target key end

     0   :  { %10 = vsyncpa [#allocation3], 0  ;;  %s922_s0 = inlined_call_operand.vmem [shape: f32[2,2,32], index: 0, kind: input, shape index: {}]   ;;  %s923_s1 = inlined_call_operand.vmem [shape: bf16[32,256], index: 1, kind: input, shape index: {}]   ;;  %s924_s2 = inlined_call_operand.vmem [shape: f32[1,256], index: 2, kind: input, shape index: {}]   ;;  %s925_s3 = inlined_call_operand.vmem [shape: bf16[256,5], index: 3, kind: input, shape index: {}]   ;;  %s926_s4 = inlined_call_operand.vmem [shape: f32[1,5], index: 4, kind: input, shape index: {}]   ;;  %s927_s5 = inlined_call_operand.hbm [shape: f32[2,1,5], index: 5, kind: output, shape index: {}]  }
   0x1   :  { %12 = vsyncpa [#allocation3 + $0x1], 0  ;;  %s762_s18 = smov 0   ;;  %s764_s19 = smov 0  }
   0x2   :  { %s766_s20 = smov 0   ;;  %s768_s21 = smov 0  }
   0x3 LB: > { %s783_s22 = sadd.s32 4294967295, %s728_s21   ;;  %s555_s23 = sadd.s32 4294967294, %s728_s21   ;;  %s728_s21 = sphi %s768_s21, %s933_s21   ;;  %s724_s20 = sphi %s766_s20, %s932_s20   ;;  %s720_s19 = sphi %s764_s19, %s931_s19   ;;  %s716_s18 = sphi %s762_s18, %s930_s18  }
   0x4   : > { %s787_s24 = sadd.s32 1, %s728_s21   ;;  %s135_s25 = sadd.s32 1, %s724_s20 }
   0x5   : > { %s132_s26 = ssub.s32 %s728_s21, %s787_s24  ;;  %p145_p0 = scmp.ne.s32.totalorder %s724_s20, %s720_s19 }
   0x6   : > { %p133_p1 = scmp.eq.s32.totalorder %s132_s26, 0  ;;  %p146_p2 = scmp.eq.s32.totalorder %s783_s22, 1 }
   0x7   : > { %p151_p3 = scmp.ne.s32.totalorder %s720_s19, %s716_s18  ;;  %p152_p4 = scmp.eq.s32.totalorder %s555_s23, 1 }
   0x8   : > { %s798_s27 = scalar_select %p133_p1, %s724_s20, %s135_s25  }
   0x9   : > { %p800_p5 = por %p146_p2, %p145_p0  ;;  %p804_p6 = por %p152_p4, %p151_p3 }
   0xa   : > { %p558_p7 = scmp.ge.s32.totalorder %s728_s21, 1  ;;  %p189_p8 = scmp.lt.s32.totalorder %s728_s21, 3 }
   0xc   : > { %p190_p9 = pnand %p558_p7, %p189_p8 }
   0xd   : > { %p215_p10 = scmp.lt.s32.totalorder (!%p190_p9), %s783_s22, 1  ;;  %s213_s26 = sand.u32 (!%p190_p9), 1, %s720_s19  }
   0xe   : > { %193 = sbr.rel (%p190_p9) target bundleno = 456 (0x1c8), region = 40  ;;  %s581_s7 = sshll.u32 (!%p190_p9), %s783_s22, 4 }
   0xf   : > { %s214_s8 = scalar_lea.vmem (!%p190_p9), [#allocation2], %s213_s26  ;;  %s887_s12 = scalar_lea.hbm (!%p190_p9), %s927_s5, %s581_s7 }
  0x10   : > { %s500_s9 = sshll.u32 (!%p190_p9), %s214_s8, 4  ;;  %s501_s9 = int_to_ptr.vmem [resolvable:$true] %s500_s9 }
  0x11   : > { %s668_s14 = scalar_lea.vmem (!%p190_p9), %s501_s9, 16 }
  0x12   : > { %p669_p11 = scmp.ne.s32.totalorder (!%p190_p9), %s501_s9, %s668_s14 }
  0x13   : > { %v646_v0 = vld [vmem:[%s923_s1 + $0x14] ss:$8 sps:$4 sm:$0xff]   ;;  %v648_v1 = vld [vmem:[%s923_s1 + $0x10] ss:$8 sps:$4 sm:$0xff]   ;;  %v730_v2 = vmov 0   ;;  %vm221_vm0 = vcmask 254976   ;;  %v257_v31 = vlaneseq }
  0x14   : > { %303 = vmatprep.mubr.bf16.mxu0 %v730_v2  ;;  %283 = vmatprep.subr.bf16.mxu0 %v646_v0  ;;  %v649_v3 = vld [vmem:[%s923_s1 + $0x4] ss:$8 sps:$4 sm:$0xff]   ;;  %v651_v4 = vld [vmem:[%s923_s1] ss:$8 sps:$4 sm:$0xff]   ;;  %s216_s13 = scalar_select %p215_p10, %s783_s22, 1  ;;  %v652_v5 = vld [vmem:[%s925_s3 + $0x78] sm:$0xff]  }
  0x15   : > { %284 = vmatpush1.bf16.msra.mxu0 %v648_v1  ;;  %584 = vmatprep.subr.bf16.mxu1 %v652_v5  ;;  %v653_v6 = vld [vmem:[%s925_s3 + $0x38] sm:$0xff]   ;;  %v654_v7 = vld [vmem:[%s925_s3 + $0x70] sm:$0xff]   ;;  %v656_v11 = vld [vmem:[%s925_s3 + $0x68] sm:$0xff]   ;;  %vm267_vm1 = vcmask 261120   ;;  %v258_v32 = vshrl.u32 %v257_v31, 7  ;;  %vm485_vm2 = vcmask 32768   ;;  %p670_p12 = pnand %p669_p11, %p800_p5 }
  0x16   : > { %285 = vmatprep.subr.bf16.mxu0 %v649_v3  ;;  %s559_s16 = sshll.u32 %s216_s13, 1  ;;  %585 = vmatpush3.bf16.msra.mxu1 %v653_v6  ;;  %v655_v9 = vld [vmem:[%s925_s3 + $0x30] sm:$0xff]   ;;  %v657_v14 = vld [vmem:[%s925_s3 + $0x28] sm:$0xff]   ;;  %v658_v15 = vld [vmem:[%s925_s3 + $0x60] sm:$0xff]   ;;  %s488_s13 = scalar_lea.sflag [#allocation3], %s213_s26 }
  0x17   : > { %s218_s30 = scalar_lea.vmem %s922_s0, %s559_s16  ;;  %586 = vmatprep.subr.bf16.mxu1 %v654_v7  ;;  %v659_v18 = vld [vmem:[%s925_s3 + $0x20] sm:$0xff]   ;;  %v660_v19 = vld [vmem:[%s925_s3 + $0x58] sm:$0xff]   ;;  %v662_v23 = vld [vmem:[%s925_s3 + $0x50] sm:$0xff]   ;;  %v259_v33 = vsub.s32 0, %v258_v32  ;;  %v263_v35 = vsub.s32 1, %v258_v32  ;;  %p671_p13 = pneg %p670_p12 }
  0x18   : > { %v220_v8 = vld [vmem:[%s218_s30] sm:$0x3]  ;;  %v661_v22 = vld [vmem:[%s925_s3 + $0x18] sm:$0xff]   ;;  %v663_v26 = vld [vmem:[%s925_s3 + $0x10] sm:$0xff]   ;;  %s731_s22 = smov [#allocation2]  }
  0x19   : > { %286 = vmatpush1.bf16.msra.mxu0 %v651_v4  ;;  %v222_v10 = vsel %vm221_vm0, %v220_v8, 0.0  ;;  %v664_v27 = vld [vmem:[%s925_s3 + $0x48] sm:$0xff]   ;;  %v666_v29 = vld [vmem:[%s925_s3 + $0x40] sm:$0xff]   ;;  %s672_s15 = sshll.u32 %s731_s22, 4  ;;  %s673_s15 = int_to_ptr.vmem [resolvable:$false] %s672_s15 }
  0x1a   : > { %v223_v12 = vrot.slane %v222_v10, 4  ;;  %587 = vmatpush3.bf16.msra.mxu1 %v655_v9  ;;  %v665_v28 = vld [vmem:[%s925_s3 + $0x8] sm:$0xff]   ;;  %v667_v30 = vld [vmem:[%s925_s3] sm:$0xff]   ;;  %s674_s16 = scalar_lea.vmem %s673_s15, 32  ;;  %p675_p0 = scmp.lt.s32.totalorder %s501_s9, %s673_s15 }
  0x1b   : > { %588 = vmatprep.subr.bf16.mxu1 %v656_v11  ;;  %v235_v34 = vld [vmem:[%s924_s2] sm:$0x3]  ;;  %p676_p1 = scmp.lt.s32.totalorder %s674_s16, %s668_s14 }
  0x1c   : > { %v224_v13 = vadd.f32 %v223_v12, %v222_v10  ;;  %v260_v36 = vrot.slane %v235_v34, %v259_v33  ;;  %v264_v37 = vrot.slane %v235_v34, %v263_v35  ;;  %v348_v49 = vld [vmem:[%s926_s4] sm:$0x1] }
  0x1d   : > { %p677_p2 = por %p676_p1, %p675_p0 }
  0x1e   : > { %v225_v16 = vrot.slane %v224_v13, 2  ;;  %589 = vmatpush3.bf16.msra.mxu1 %v657_v14 }
  0x1f   : > { %590 = vmatprep.subr.bf16.mxu1 %v658_v15  ;;  %p678_p3 = pnand %p677_p2, %p671_p13 }
  0x20   : > { %v226_v17 = vadd.f32 %v225_v16, %v224_v13 }
  0x22   : > { %v227_v20 = vrot.slane %v226_v17, 1  ;;  %591 = vmatpush3.bf16.msra.mxu1 %v659_v18 }
  0x23   : > { %592 = vmatprep.subr.bf16.mxu1 %v660_v19 }
  0x24   : > { %v228_v21 = vadd.f32 %v227_v20, %v226_v17 }
  0x26   : > { %v229_v24 = vmul.f32 0.5, %v228_v21  ;;  %593 = vmatpush3.bf16.msra.mxu1 %v661_v22 }
  0x27   : > { %594 = vmatprep.subr.bf16.mxu1 %v662_v23 }
  0x28   : > { %v230_v25 = vpack.c.bf16 %v229_v24, %v229_v24 }
  0x2a   : > { %564 = vmatmul.mubr.msk.bf16.vlgmr.msra.gmra.mxu0 %vm267_vm1, %v230_v25  ;;  %595 = vmatpush3.bf16.msra.mxu1 %v663_v26 }
  0x2b   : > { %596 = vmatprep.subr.bf16.mxu1 %v664_v27 }
  0x2e   : > { %597 = vmatpush3.bf16.msra.mxu1 %v665_v28 }
  0x2f   : > { %598 = vmatprep.subr.bf16.mxu1 %v666_v29 }
  0x32   : > { %599 = vmatpush3.bf16.msra.mxu1 %v667_v30 }
  0xea   : > { %v305_v38 = vpop.f32.mrf.mxu0 }
  0xeb   : > { %v306_v39 = vadd.f32 %v305_v38, %v260_v36 }
  0xec   : > { %v307_v40 = vpop.f32.mrf.mxu0 }
  0xed   : > { %v308_v41 = vadd.f32 %v307_v40, %v264_v37  ;;  %v312_v42 = vmax.f32 %v306_v39, 0.0 }
  0xee   : > { %v309_v43 = vpop.f32.mrf.mxu0 }
  0xef   : > { %v313_v44 = vmax.f32 %v308_v41, 0.0  ;;  %v314_v47 = vpack.c.bf16 %v312_v42, %v312_v42 }
  0xf0   : > { %v310_v45 = vpop.f32.mrf.mxu0 }
  0xf1   : > { %v315_v46 = vpack.c.bf16 %v313_v44, %v313_v44 }
  0xf3   : > { %477 = vmatprep.mubr.bf16.mxu1 %v315_v46 }
  0xf4   : > { %478 = vmatmul.mubr.bf16.vlgmr.msra.gmra.mxu1 %v314_v47 }
 0x1b4   : > { %v600_v48 = vpop.f32.mrf.mxu1 }
 0x1b6   : > { %v601_v50 = vpop.f32.mrf.mxu1 }
 0x1b7   : > { %v602_v51 = vadd.f32 %v601_v50, %v600_v48 }
 0x1b8   : > { %v603_v52 = vpop.f32.mrf.mxu1 }
 0x1b9   : > { %v480_v53 = vadd.f32 %v602_v51, %v348_v49 }
 0x1ba   : > { %v604_v54 = vpop.f32.mrf.mxu1 }
 0x1bb   : > { %486 = vst.msk [vmem:[%s214_s8] sm:$0x1] %vm485_vm2, %v480_v53 }
 0x1bc   : > { %681 = shalt.err (!%p678_p3)
}
 0x1bd   : > { %s682_s17 = scalar_lea.hbm %s887_s12, 16  ;;  %s686_s26 = scalar_lea.hbm %s927_s5, 32 }
 0x1be   : > { %p683_p4 = scmp.ne.s32.totalorder %s887_s12, %s682_s17  ;;  %p687_p9 = scmp.lt.s32.totalorder %s887_s12, %s927_s5 }
 0x1bf   : > { %p688_p10 = scmp.lt.s32.totalorder %s686_s26, %s682_s17 }
 0x1c0   : > { %p684_p7 = pnand %p683_p4, %p800_p5 }
 0x1c1   : > { %p689_p11 = por %p688_p10, %p687_p9 }
 0x1c2   : > { %p685_p8 = pneg %p684_p7 }
 0x1c4   : > { %p690_p12 = pnand %p689_p11, %p685_p8 }
 0x1c6   : > { %693 = shalt.err (!%p690_p12)
}
 0x1c7   : > { %606 = dma.vmem_to_hbm [thread:$0]  (%p800_p5), %s501_s9, 16, %s887_s12, %s488_s13  }
 0x1c8 PF: > { %p612_p13 = scmp.ge.s32.totalorder %s728_s21, 2  ;;  %s512_s7 = sand.u32 1, %s716_s18  }
 0x1c9   : > { %s513_s8 = scalar_lea.sflag [#allocation3], %s512_s7 }
 0x1ca   : > { %p609_p0 = pnand %p612_p13, %p804_p6 }
 0x1cc   : > { %p610_p1 = pneg %p609_p0 }
 0x1ce   : > { %711 = dma.done.wait (%p610_p1), %s513_s8, 16  }
 0x1cf   : > { %713 = vsyncadd (%p610_p1), %s513_s8, 4294967280  ;;  %p15_p2 = scmp.ge.s32.totalorder %s787_s24, 4   ;;  %s930_s18 = smov %s720_s19 }
 0x1d0   : > { %s931_s19 = smov %s724_s20  ;;  %s932_s20 = smov %s798_s27 }
 0x1d1   : > { %s933_s21 = smov %s787_s24  ;;  %17 = sbr.rel (!%p15_p2) target bundleno = 3 (0x3), region = 75 }
 0x1d6   :  { %517 = vsyncpa [#allocation3], 1 }
 0x1d7   :  { %519 = vsyncpa [#allocation3 + $0x1], 1 }

// kernel: vision_model_forward.2
= control target key start
LH: loop header
LB: loop body
LE: loop exit
PB: predicated region body
PF: predicated region fallthrough
CT: control target
= control target key end

     0   :  { %s2502_s24 = smov 0   ;;  %s2819_s0 = inlined_call_operand.vmem [shape: f32[4,5,192], index: 0, kind: input, shape index: {}]   ;;  %s2820_s1 = inlined_call_operand.vmem [shape: bf16[192,32], index: 1, kind: input, shape index: {}]   ;;  %s2821_s2 = inlined_call_operand.vmem [shape: f32[5,32], index: 2, kind: input, shape index: {}]   ;;  %s2822_s3 = inlined_call_operand.vmem [shape: f32[1,32], index: 3, kind: input, shape index: {}]   ;;  %s2823_s4 = inlined_call_operand.vmem [shape: f32[1,32], index: 4, kind: input, shape index: {}]   ;;  %s2824_s5 = inlined_call_operand.vmem [shape: f32[2,1,32], index: 5, kind: input, shape index: {}]   ;;  %s2825_s6 = inlined_call_operand.vmem [shape: f32[2,1,32], index: 6, kind: input, shape index: {}]   ;;  %s2826_s7 = inlined_call_operand.vmem [shape: bf16[2,32,96], index: 7, kind: input, shape index: {}]   ;;  %s2827_s8 = inlined_call_operand.vmem [shape: f32[2,1,96], index: 8, kind: input, shape index: {}]   ;;  %s2828_s9 = inlined_call_operand.vmem [shape: bf16[2,32,32], index: 9, kind: input, shape index: {}]   ;;  %s2829_s10 = inlined_call_operand.vmem [shape: f32[2,1,32], index: 10, kind: input, shape index: {}]   ;;  %s2830_s11 = inlined_call_operand.vmem [shape: f32[2,1,32], index: 11, kind: input, shape index: {}]   ;;  %s2831_s12 = inlined_call_operand.vmem [shape: f32[2,1,32], index: 12, kind: input, shape index: {}]   ;;  %s2832_s13 = inlined_call_operand.vmem [shape: bf16[2,32,64], index: 13, kind: input, shape index: {}]   ;;  %s2833_s14 = inlined_call_operand.vmem [shape: f32[2,1,64], index: 14, kind: input, shape index: {}]   ;;  %s2834_s15 = inlined_call_operand.vmem [shape: bf16[2,64,32], index: 15, kind: input, shape index: {}]   ;;  %s2835_s16 = inlined_call_operand.vmem [shape: f32[2,1,32], index: 16, kind: input, shape index: {}]   ;;  %s2836_s17 = inlined_call_operand.vmem [shape: f32[4,1,32], index: 17, kind: output, shape index: {}]  }
   0x1   :  { %2838 = sst [smem:[#allocation2_spill]] %s2819_s0 }
   0x2   :  { %2839 = sst [smem:[#allocation3_spill]] %s2820_s1 }
   0x3 LB: > { %s2029_s25 = sadd.s32 4294967295, %s2401_s24   ;;  %p2033_p0 = scmp.ge.s32.totalorder %s2401_s24, 1  ;;  %s2401_s24 = sphi %s2502_s24, %s27_s24  }
   0x4   : > { %p487_p1 = scmp.lt.s32.totalorder %s2401_s24, 5 }
   0x6   : > { %p488_p2 = pnand %p2033_p0, %p487_p1 }
   0x7   : > { %s2840_s28 = sld [smem:[#allocation3_spill]] (!%p488_p2)  ;;  %p537_p3 = scmp.lt.s32.totalorder (!%p488_p2), %s2029_s25, 3 }
   0x8   : > { %491 = sbr.rel (%p488_p2) target bundleno = 5646 (0x160e), region = 88  ;;  %s2841_s21 = sld [smem:[#allocation2_spill]] (!%p488_p2) }
   0x9   : > { %s2407_s23 = smov (!%p488_p2), 80   ;;  %s2408_s26 = smov (!%p488_p2), 64  }
   0xa   : > { %s2409_s27 = smov (!%p488_p2), 112   ;;  %s2411_s29 = smov (!%p488_p2), 48  }
   0xd   : > { %v2329_v0 = vld [vmem:[%s2840_s28 + $0x38] sm:$0xff]   ;;  %v2403_v1 = vmov 0   ;;  %v2330_v2 = vld [vmem:[%s2840_s28 + $0x30] sm:$0xff]   ;;  %s2843_s25 = smov (!%p537_p3, %s2029_s25), 3  ;;  %v2331_v3 = vld [vmem:[%s2840_s28 + $0x28] sm:$0xff]   ;;  %vm647_vm0 = vcmask 523264  }
   0xe   : > { %651 = vmatprep.subr.bf16.mxu0 %v2403_v1  ;;  %s2137_s19 = sshll.u32 %s2843_s25, 4  ;;  %v2332_v4 = vld [vmem:[%s2840_s28 + $0x20] sm:$0xff]   ;;  %v2333_v5 = vld [vmem:[%s2840_s28 + $0x18] sm:$0xff]   ;;  %v2334_v8 = vld [vmem:[%s2840_s28 + $0x10] sm:$0xff]   ;;  %vm693_vm1 = vcmask 258048   ;;  %v2404_v45 = vmov 0.0  }
   0xf   : > { %652 = vmatpush1.bf16.msra.mxu0 %v2329_v0  ;;  %s2525_s22 = scalar_lea.vmem %s2841_s21, %s2137_s19  ;;  %v2335_v9 = vld [vmem:[%s2840_s28 + $0x8] sm:$0xff]   ;;  %v2336_v10 = vld [vmem:[%s2840_s28] sm:$0xff]   ;;  %v2337_v11 = vld [vmem:[%s2840_s28 + $0x58] sm:$0xff]   ;;  %2184 = vmatprep.subr.bf16.mxu1 %v2404_v45  ;;  %vm2405_vm2 = vmmov 0   ;;  %vm775_vm3 = vcmask 261120   ;;  %s2406_s21 = smov 96  }
  0x10   : > { %653 = vmatprep.subr.bf16.mxu0 %v2403_v1  ;;  %v547_v6 = vld [vmem:[%s2525_s22 + $0x8] sm:$0x1f]  ;;  %v2338_v12 = vld [vmem:[%s2840_s28 + $0x50] sm:$0xff]   ;;  %v2340_v14 = vld [vmem:[%s2840_s28 + $0x40] sm:$0xff]   ;;  %2188 = vmatprep.mubr.msk.bf16.mxu1 %vm2405_vm2, %v2404_v45  ;;  %vm823_vm4 = vcmask 130048   ;;  %vm871_vm5 = vcmask 36864  }
  0x11   : > { %v573_v7 = vpack.c.bf16 %v547_v6, %v547_v6  ;;  %v2339_v13 = vld [vmem:[%s2840_s28 + $0x48] sm:$0xff]   ;;  %v546_v15 = vld [vmem:[%s2525_s22] sm:$0x1f]  ;;  %vm890_vm6 = vcmask 1041408   ;;  %vm891_vm7 = vcmask 1042432   ;;  %vm886_vm8 = vcmask 39936  }
  0x12   : > { %v572_v16 = vpack.c.bf16 %v546_v15, %v546_v15  ;;  %v574_v17 = vld [vmem:[%s2821_s2] sm:$0x1f]  ;;  %v2341_v44 = vld [vmem:[%s2826_s7 + $0x8] sm:$0xff]   ;;  %vm1980_vm9 = vcmask 253952  }
  0x13   : > { %654 = vmatpush1.bf16.msra.mxu0 %v2330_v2  ;;  %2048 = vmatprep.mubr.msk.bf16.mxu0 %vm647_vm0, %v573_v7  ;;  %v2049_v33 = vld [vmem:[%s2822_s3] ss:$0 sm:$0xff] }
  0x14   : > { %655 = vmatprep.subr.bf16.mxu0 %v2403_v1  ;;  %v2050_v35 = vld [vmem:[%s2823_s4] ss:$0 sm:$0xff]  ;;  %2185 = vmatpush3.bf16.msra.mxu1 %v2341_v44 }
  0x15   : > { %v2342_v46 = vld [vmem:[%s2826_s7] sm:$0xff]   ;;  %2186 = vmatprep.subr.bf16.mxu1 %v2404_v45 }
  0x16   : > { %v2051_v51 = vld [vmem:[%s2824_s5] ss:$0 sm:$0xff] }
  0x17   : > { %656 = vmatpush1.bf16.msra.mxu0 %v2331_v3  ;;  %v2052_v53 = vld [vmem:[%s2825_s6] ss:$0 sm:$0xff] }
  0x18   : > { %657 = vmatprep.subr.bf16.mxu0 %v2403_v1  ;;  %2187 = vmatpush3.bf16.msra.mxu1 %v2342_v46  ;;  %v2053_v57 = vld [vmem:[%s2827_s8] ss:$0 sm:$0xff] }
  0x19   : > { %2192 = vmatprep.subr.bf16.mxu1 %v2404_v45 }
  0x1b   : > { %658 = vmatpush1.bf16.msra.mxu0 %v2332_v4 }
  0x1c   : > { %659 = vmatprep.subr.bf16.mxu0 %v2403_v1 }
  0x1f   : > { %660 = vmatpush1.bf16.msra.mxu0 %v2333_v5 }
  0x20   : > { %661 = vmatprep.subr.bf16.mxu0 %v2403_v1 }
  0x23   : > { %662 = vmatpush1.bf16.msra.mxu0 %v2334_v8 }
  0x24   : > { %663 = vmatprep.subr.bf16.mxu0 %v2403_v1 }
  0x27   : > { %664 = vmatpush1.bf16.msra.mxu0 %v2335_v9 }
  0x28   : > { %665 = vmatprep.subr.bf16.mxu0 %v2403_v1 }
  0x2b   : > { %666 = vmatpush1.bf16.msra.mxu0 %v2336_v10 }
  0x2c   : > { %675 = vmatprep.subr.bf16.mxu0 %v2403_v1 }
  0x2f   : > { %676 = vmatpush2.bf16.msra.mxu0 %v2337_v11 }
  0x30   : > { %677 = vmatprep.subr.bf16.mxu0 %v2403_v1 }
  0x33   : > { %678 = vmatpush2.bf16.msra.mxu0 %v2338_v12 }
  0x34   : > { %679 = vmatprep.subr.bf16.mxu0 %v2403_v1 }
  0x37   : > { %680 = vmatpush2.bf16.msra.mxu0 %v2339_v13  ;;  %v2410_v13 = vmov 65535  }
  0x38   : > { %681 = vmatprep.subr.bf16.mxu0 %v2403_v1 }
  0x3b   : > { %682 = vmatpush2.bf16.msra.mxu0 %v2340_v14  ;;  %v892_v14 = vsel %vm890_vm6, 4294967295, %v2410_v13 }
  0x3c   : > { %2236 = vmatprep.subr.bf16.mxu0 %v2404_v45 }
  0x3e   : > { %684 = vmatmul.mubr.bf16.vlgmr.msra.gmra.mxu0 %v572_v16  ;;  %v2618_v16 = vsel %vm891_vm7, %v892_v14, 0 }
  0x3f   : > { %2244 = vmatprep.mubr.msk.bf16.mxu0 %vm2405_vm2, %v2404_v45 }
  0xfe   : > { %v685_v18 = vpop.f32.mrf.mxu0 }
  0xff   : > { %v686_v19 = vadd.f32 %v685_v18, %v574_v17 }
 0x100   : > { %v687_v20 = vpop.f32.mrf.mxu0 }
 0x101   : > { %v694_v21 = vsel %vm693_vm1, %v686_v19, 0.0 }
 0x102   : > { %v688_v22 = vpop.f32.mrf.mxu0  ;;  %695 = vadd.xlane.f32.xlu0 %v694_v21 }
 0x104   : > { %v689_v23 = vpop.f32.mrf.mxu0 }
 0x18b   : > { %v696_v24 = vpop.xlane.xlu0 %695 }
 0x18c   : > { %v698_v25 = vmul.f32 0.03125, %v696_v24 }
 0x18e   : > { %v699_v26 = vsub.f32 %v686_v19, %v698_v25 }
 0x190   : > { %v700_v27 = vmul.f32 %v699_v26, %v699_v26 }
 0x192   : > { %v701_v28 = vsel %vm693_vm1, %v700_v27, 0.0 }
 0x193   : > { %702 = vadd.xlane.f32.xlu0 %v701_v28 }
 0x21c   : > { %v703_v29 = vpop.xlane.xlu0 %702 }
 0x21d   : > { %v704_v30 = vmul.f32 0.03125, %v703_v29 }
 0x21f   : > { %v705_v31 = vadd.f32 1e-05, %v704_v30 }
 0x221   : > { %2361 = vrsqrt.f32 %v705_v31 }
 0x22e   : > { %v2362_v32 = vpop.eup %2361 }
 0x22f   : > { %v707_v34 = vmul.f32 %v2362_v32, %v699_v26 }
 0x231   : > { %v714_v36 = vmul.f32 %v2049_v33, %v707_v34 }
 0x233   : > { %v2568_v37 = vadd.f32 %v2050_v35, %v714_v36 }
 0x235   : > { %v724_v38 = vsel %vm693_vm1, %v2568_v37, 0.0 }
 0x236   : > { %725 = vadd.xlane.f32.xlu1 %v724_v38 }
 0x2bf   : > { %v726_v39 = vpop.xlane.xlu1 %725 }
 0x2c0   : > { %v727_v40 = vmul.f32 0.03125, %v726_v39 }
 0x2c2   : > { %v728_v41 = vsub.f32 %v2568_v37, %v727_v40 }
 0x2c4   : > { %v729_v42 = vmul.f32 %v728_v41, %v728_v41 }
 0x2c6   : > { %v730_v43 = vsel %vm693_vm1, %v729_v42, 0.0 }
 0x2c7   : > { %731 = vadd.xlane.f32.xlu1 %v730_v43 }
 0x350   : > { %v732_v47 = vpop.xlane.xlu1 %731 }
 0x351   : > { %v733_v48 = vmul.f32 0.03125, %v732_v47  ;;  %v2343_v47 = vld [vmem:[%s2828_s9 + $0x8] sm:$0xff]  }
 0x353   : > { %v734_v49 = vadd.f32 1e-05, %v733_v48 }
 0x355   : > { %2363 = vrsqrt.f32 %v734_v49 }
 0x362   : > { %v2364_v50 = vpop.eup %2363 }
 0x363   : > { %v736_v52 = vmul.f32 %v2364_v50, %v728_v41  ;;  %v2344_v50 = vld [vmem:[%s2828_s9] sm:$0xff]  }
 0x365   : > { %v743_v54 = vmul.f32 %v2051_v51, %v736_v52 }
 0x367   : > { %v750_v55 = vadd.f32 %v2052_v53, %v743_v54 }
 0x369   : > { %v755_v56 = vpack.c.bf16 %v750_v55, %v750_v55 }
 0x36b   : > { %2189 = vmatmul.mubr.msk.bf16.vlgmr.msra.gmra.mxu1 %vm775_vm3, %v755_v56 }
 0x36c   : > { %2194 = vmatprep.mubr.msk.bf16.mxu1 %vm2405_vm2, %v2404_v45 }
 0x42b   : > { %v813_v58 = vpop.f32.mrf.mxu1 }
 0x42c   : > { %v814_v59 = vadd.f32 %v2053_v57, %v813_v58 }
 0x42d   : > { %v2190_v60 = vpop.f32.mrf.mxu1 }
 0x42e   : > { %v2600_v61 = vpack.c.bf16 %v814_v59, %v814_v59 }
 0x42f   : > { %v816_v62 = vpop.f32.mrf.mxu1 }
 0x430   : > { %821 = vrot.lane.b32.xlu0 %v2600_v61, %s2406_s21  ;;  %v2065_v62 = vld [vmem:[%s2829_s10] ss:$0 sm:$0xff] }
 0x431   : > { %v2191_v63 = vpop.f32.mrf.mxu1 }
 0x434   : > { %942 = vrot.lane.b32.xlu0 %v2600_v61, %s2407_s23 }
 0x4a2   : > { %v822_v0 = vpop.permute.xlu0 %821 }
 0x4a3   : > { %v828_v1 = vsel %vm823_vm4, %v822_v0, 0 }
 0x4a4   : > { %2193 = vmatpush3.bf16.xpose.msra.mxu1 %v828_v1 }
 0x4a5   : > { %2198 = vmatprep.subr.bf16.mxu1 %v2404_v45 }
 0x4a6   : > { %v943_v21 = vpop.permute.xlu0 %942 }
 0x4a7   : > { %v948_v23 = vsel %vm823_vm4, %v943_v21, 0 }
 0x4ab   : > { %2195 = vmatmul.mubr.msk.bf16.vlgmr.msra.gmra.mxu1 %vm823_vm4, %v2600_v61 }
 0x4ac   : > { %2200 = vmatprep.mubr.msk.bf16.mxu1 %vm2405_vm2, %v2404_v45 }
 0x56b   : > { %v864_v2 = vpop.f32.mrf.mxu1 }
 0x56c   : > { %v870_v3 = vmul.f32 0.25, %v864_v2 }
 0x56d   : > { %v2196_v4 = vpop.f32.mrf.mxu1 }
 0x56e   : > { %v872_v5 = vsel %vm871_vm5, %v870_v3, -inf }
 0x56f   : > { %873 = vmax.xlane.f32.xlu1 %v872_v5  ;;  %v867_v6 = vpop.f32.mrf.mxu1 }
 0x571   : > { %v2197_v7 = vpop.f32.mrf.mxu1 }
 0x5f8   : > { %v874_v8 = vpop.xlane.xlu1 %873 }
 0x5f9   : > { %v875_v9 = vsub.f32 %v870_v3, %v874_v8 }
 0x5fb   : > { %v876_v10 = vmul.f32 1.442695, %v875_v9 }
 0x5fd   : > { %2365 = vpow2.f32 %v876_v10  ;;  %v2345_v10 = vld [vmem:[%s2832_s13 + $0x8] sm:$0xff]  }
 0x60a   : > { %v2366_v11 = vpop.eup %2365 }
 0x60b   : > { %v878_v12 = vsel %vm871_vm5, %v2366_v11, 0.0 }
 0x60c   : > { %879 = vadd.xlane.f32.xlu1 %v878_v12 }
 0x61d   : > { %884 = vrot.lane.b32.xlu1 %v2600_v61, %s2408_s26 }
 0x621   : > { %940 = vrot.lane.b32.xlu1 %v2600_v61, %s2409_s27 }
 0x695   : > { %v880_v15 = vpop.xlane.xlu1 %879 }
 0x696   : > { %2367 = vrcp.f32 %v880_v15  ;;  %v2066_v15 = vld [vmem:[%s2830_s11] ss:$0 sm:$0xff] }
 0x699   : > { %v885_v17 = vpop.permute.xlu1 %884 }
 0x69a   : > { %v895_v18 = vand.u32 %v2618_v16, %v885_v17 }
 0x69c   : > { %2199 = vmatpush3.bf16.msra.mxu1 %v895_v18  ;;  %v2067_v18 = vld [vmem:[%s2831_s12] ss:$0 sm:$0xff] }
 0x69d   : > { %2204 = vmatprep.subr.bf16.mxu1 %v2404_v45  ;;  %v941_v24 = vpop.permute.xlu1 %940 }
 0x6a3   : > { %v2368_v19 = vpop.eup %2367 }
 0x6a4   : > { %v882_v20 = vmul.f32 %v2368_v19, %v2366_v11 }
 0x6a6   : > { %v883_v22 = vpack.c.bf16 %v882_v20, %v882_v20 }
 0x6a8   : > { %2201 = vmatmul.mubr.msk.bf16.vlgmr.msra.gmra.mxu1 %vm886_vm8, %v883_v22  ;;  %v2347_v22 = vld [vmem:[%s2834_s15 + $0x18] sm:$0xff]  }
 0x6a9   : > { %2205 = vmatpush3.bf16.xpose.msra.mxu1 %v948_v23  ;;  %2206 = vmatprep.mubr.msk.bf16.mxu1 %vm2405_vm2, %v2404_v45  ;;  %v2348_v23 = vld [vmem:[%s2834_s15 + $0x10] sm:$0xff]  }
 0x6aa   : > { %2210 = vmatprep.subr.bf16.mxu1 %v2404_v45  ;;  %2237 = vmatpush3.bf16.msra.mxu0 %v2347_v22 }
 0x6ab   : > { %2238 = vmatprep.subr.bf16.mxu0 %v2404_v45 }
 0x6ae   : > { %2239 = vmatpush3.bf16.msra.mxu0 %v2348_v23 }
 0x6af   : > { %2240 = vmatprep.subr.bf16.mxu0 %v2404_v45 }
 0x6b0   : > { %2207 = vmatmul.mubr.msk.bf16.vlgmr.msra.gmra.mxu1 %vm823_vm4, %v941_v24  ;;  %v2349_v24 = vld [vmem:[%s2834_s15 + $0x8] sm:$0xff]  }
 0x6b1   : > { %2212 = vmatprep.mubr.msk.bf16.mxu1 %vm2405_vm2, %v2404_v45 }
 0x6b2   : > { %2241 = vmatpush3.bf16.msra.mxu0 %v2349_v24 }
 0x6b3   : > { %2242 = vmatprep.subr.bf16.mxu0 %v2404_v45 }
 0x768   : > { %v931_v25 = vpop.f32.mrf.mxu1 }
 0x769   : > { %v939_v55 = vpack.c.bf16 %v931_v25, %v931_v25  ;;  %v2350_v25 = vld [vmem:[%s2834_s15] sm:$0xff]  }
 0x76a   : > { %v2202_v26 = vpop.f32.mrf.mxu1  ;;  %2243 = vmatpush3.bf16.msra.mxu0 %v2350_v25 }
 0x76b   : > { %2262 = vmatprep.subr.bf16.mxu0 %v2404_v45  ;;  %v2068_v26 = vld [vmem:[%s2833_s14] ss:$0 sm:$0xff] }
 0x76c   : > { %v934_v27 = vpop.f32.mrf.mxu1 }
 0x76e   : > { %v2203_v28 = vpop.f32.mrf.mxu1 }
 0x770   : > { %v984_v29 = vpop.f32.mrf.mxu1 }
 0x771   : > { %v990_v30 = vmul.f32 0.25, %v984_v29 }
 0x772   : > { %v2208_v31 = vpop.f32.mrf.mxu1 }
 0x773   : > { %v991_v32 = vsel %vm871_vm5, %v990_v30, -inf }
 0x774   : > { %992 = vmax.xlane.f32.xlu0 %v991_v32  ;;  %v987_v33 = vpop.f32.mrf.mxu1 }
 0x776   : > { %v2209_v34 = vpop.f32.mrf.mxu1 }
 0x78a   : > { %1003 = vrot.lane.b32.xlu0 %v2600_v61, %s2411_s29 }
 0x7fd   : > { %v993_v35 = vpop.xlane.xlu0 %992 }
 0x7fe   : > { %v994_v36 = vsub.f32 %v990_v30, %v993_v35 }
 0x800   : > { %v995_v38 = vmul.f32 1.442695, %v994_v36 }
 0x801   : > { %v1004_v39 = vpop.permute.xlu0 %1003 }
 0x802   : > { %2369 = vpow2.f32 %v995_v38  ;;  %v1009_v40 = vand.u32 %v1004_v39, %v2618_v16 }
 0x804   : > { %2211 = vmatpush3.bf16.msra.mxu1 %v1009_v40  ;;  %v2073_v40 = vld [vmem:[%s2835_s16] ss:$0 sm:$0xff] }
 0x805   : > { %2216 = vmatprep.subr.bf16.mxu1 %v2404_v45 }
 0x80f   : > { %v2370_v41 = vpop.eup %2369 }
 0x810   : > { %v997_v42 = vsel %vm871_vm5, %v2370_v41, 0.0 }
 0x811   : > { %998 = vadd.xlane.f32.xlu1 %v997_v42 }
 0x89a   : > { %v999_v43 = vpop.xlane.xlu1 %998 }
 0x89b   : > { %2371 = vrcp.f32 %v999_v43 }
 0x8a8   : > { %v2372_v44 = vpop.eup %2371 }
 0x8a9   : > { %v1001_v46 = vmul.f32 %v2372_v44, %v2370_v41 }
 0x8ab   : > { %v1002_v48 = vpack.c.bf16 %v1001_v46, %v1001_v46 }
 0x8ad   : > { %2213 = vmatmul.mubr.msk.bf16.vlgmr.msra.gmra.mxu1 %vm886_vm8, %v1002_v48 }
 0x8ae   : > { %2217 = vmatpush3.bf16.msra.mxu1 %v2343_v47  ;;  %2218 = vmatprep.mubr.msk.bf16.mxu1 %vm2405_vm2, %v2404_v45 }
 0x8af   : > { %2222 = vmatprep.subr.bf16.mxu1 %v2404_v45 }
 0x96d   : > { %v1045_v49 = vpop.f32.mrf.mxu1 }
 0x96e   : > { %v1053_v51 = vpack.c.bf16 %v1045_v49, %v1045_v49 }
 0x96f   : > { %v2214_v52 = vpop.f32.mrf.mxu1 }
 0x970   : > { %2219 = vmatmul.mubr.msk.bf16.vlgmr.msra.gmra.mxu1 %vm823_vm4, %v1053_v51 }
 0x971   : > { %v1048_v53 = vpop.f32.mrf.mxu1  ;;  %2223 = vmatpush3.bf16.msra.mxu1 %v2344_v50  ;;  %2224 = vmatprep.mubr.msk.bf16.mxu1 %vm2405_vm2, %v2404_v45 }
 0x972   : > { %2228 = vmatprep.subr.bf16.mxu1 %v2404_v45 }
 0x973   : > { %v2215_v54 = vpop.f32.mrf.mxu1 }
 0x974   : > { %v2351_v54 = vld [vmem:[%s2826_s7 + $0x18] sm:$0xff]  }
 0x978   : > { %2225 = vmatmul.mubr.msk.bf16.vlgmr.msra.gmra.mxu1 %vm823_vm4, %v939_v55  ;;  %v2352_v55 = vld [vmem:[%s2826_s7 + $0x10] sm:$0xff]  }
 0x979   : > { %2232 = vmatprep.mubr.msk.bf16.mxu1 %vm2405_vm2, %v2404_v45  ;;  %2229 = vmatpush3.bf16.msra.mxu1 %v2345_v10 }
 0x97a   : > { %2230 = vmatprep.subr.bf16.mxu1 %v2404_v45 }
 0xa30   : > { %v1097_v56 = vpop.f32.mrf.mxu1 }
 0xa32   : > { %v2220_v57 = vpop.f32.mrf.mxu1 }
 0xa34   : > { %v1100_v58 = vpop.f32.mrf.mxu1 }
 0xa36   : > { %v2221_v59 = vpop.f32.mrf.mxu1 }
 0xa38   : > { %v1146_v60 = vpop.f32.mrf.mxu1 }
 0xa39   : > { %v1147_v61 = vadd.f32 %v1146_v60, %v1097_v56  ;;  %v2081_v60 = vld [vmem:[%s2824_s5 + $0x1] ss:$0 sm:$0xff] }
 0xa3a   : > { %v2226_v63 = vpop.f32.mrf.mxu1 }
 0xa3b   : > { %v1152_v0 = vadd.f32 %v1147_v61, %v2568_v37  ;;  %v2346_v37 = vld [vmem:[%s2832_s13] sm:$0xff]  }
 0xa3c   : > { %v1149_v1 = vpop.f32.mrf.mxu1  ;;  %2231 = vmatpush3.bf16.msra.mxu1 %v2346_v37 }
 0xa3d   : > { %v1160_v2 = vadd.f32 %v2065_v62, %v1152_v0  ;;  %2248 = vmatprep.subr.bf16.mxu1 %v2404_v45  ;;  %v2082_v62 = vld [vmem:[%s2825_s6 + $0x1] ss:$0 sm:$0xff] }
 0xa3e   : > { %v2227_v3 = vpop.f32.mrf.mxu1 }
 0xa3f   : > { %v1163_v4 = vsel %vm693_vm1, %v1160_v2, 0.0 }
 0xa40   : > { %1164 = vadd.xlane.f32.xlu1 %v1163_v4 }
 0xac9   : > { %v1165_v5 = vpop.xlane.xlu1 %1164 }
 0xaca   : > { %v1166_v6 = vmul.f32 0.03125, %v1165_v5 }
 0xacc   : > { %v1167_v7 = vsub.f32 %v1160_v2, %v1166_v6 }
 0xace   : > { %v1168_v8 = vmul.f32 %v1167_v7, %v1167_v7 }
 0xad0   : > { %v1169_v9 = vsel %vm693_vm1, %v1168_v8, 0.0 }
 0xad1   : > { %1170 = vadd.xlane.f32.xlu1 %v1169_v9 }
 0xb5a   : > { %v1171_v11 = vpop.xlane.xlu1 %1170 }
 0xb5b   : > { %v1172_v12 = vmul.f32 0.03125, %v1171_v11 }
 0xb5d   : > { %v1173_v13 = vadd.f32 1e-05, %v1172_v12 }
 0xb5f   : > { %2373 = vrsqrt.f32 %v1173_v13 }
 0xb6c   : > { %v2374_v14 = vpop.eup %2373 }
 0xb6d   : > { %v1175_v17 = vmul.f32 %v2374_v14, %v1167_v7 }
 0xb6f   : > { %v1182_v19 = vmul.f32 %v2066_v15, %v1175_v17 }
 0xb71   : > { %v1189_v20 = vadd.f32 %v2067_v18, %v1182_v19 }
 0xb73   : > { %v1194_v21 = vpack.c.bf16 %v1189_v20, %v1189_v20 }
 0xb75   : > { %2233 = vmatmul.mubr.msk.bf16.vlgmr.msra.gmra.mxu1 %vm775_vm3, %v1194_v21 }
 0xb76   : > { %2252 = vmatprep.mubr.msk.bf16.mxu1 %vm2405_vm2, %v2404_v45  ;;  %2249 = vmatpush3.bf16.msra.mxu1 %v2351_v54 }
 0xb77   : > { %2250 = vmatprep.subr.bf16.mxu1 %v2404_v45 }
 0xb7a   : > { %2251 = vmatpush3.bf16.msra.mxu1 %v2352_v55 }
 0xb7b   : > { %2256 = vmatprep.subr.bf16.mxu1 %v2404_v45 }
 0xc35   : > { %v1251_v27 = vpop.f32.mrf.mxu1 }
 0xc36   : > { %v1252_v28 = vadd.f32 %v2068_v26, %v1251_v27 }
 0xc37   : > { %v2234_v29 = vpop.f32.mrf.mxu1 }
 0xc38   : > { %v2072_v30 = vmul.f32 -1.702, %v1252_v28 }
 0xc39   : > { %v1254_v31 = vpop.f32.mrf.mxu1 }
 0xc3a   : > { %v1259_v32 = vmul.f32 1.442695, %v2072_v30 }
 0xc3b   : > { %v2235_v33 = vpop.f32.mrf.mxu1 }
 0xc3c   : > { %2375 = vpow2.f32 %v1259_v32 }
 0xc49   : > { %v2376_v34 = vpop.eup %2375 }
 0xc4a   : > { %v1261_v35 = vadd.f32 1.0, %v2376_v34 }
 0xc4c   : > { %2377 = vrcp.f32 %v1261_v35 }
 0xc59   : > { %v2378_v36 = vpop.eup %2377 }
 0xc5a   : > { %v1264_v38 = vmul.f32 %v2378_v36, %v1252_v28 }
 0xc5c   : > { %v1273_v39 = vpack.c.bf16 %v1264_v38, %v1264_v38 }
 0xc5e   : > { %2245 = vmatmul.mubr.msk.bf16.vlgmr.msra.gmra.mxu0 %vm647_vm0, %v1273_v39 }
 0xc5f   : > { %2264 = vmatprep.mubr.msk.bf16.mxu0 %vm2405_vm2, %v2404_v45 }
 0xd1e   : > { %v1342_v41 = vpop.f32.mrf.mxu0 }
 0xd1f   : > { %v1343_v42 = vadd.f32 %v2073_v40, %v1342_v41 }
 0xd20   : > { %v2246_v43 = vpop.f32.mrf.mxu0 }
 0xd21   : > { %v2701_v44 = vadd.f32 %v1343_v42, %v1160_v2  ;;  %v2088_v2 = vld [vmem:[%s2827_s8 + $0x1] ss:$0 sm:$0xff] }
 0xd22   : > { %v1345_v46 = vpop.f32.mrf.mxu0 }
 0xd23   : > { %v1353_v47 = vsel %vm693_vm1, %v2701_v44, 0.0 }
 0xd24   : > { %1354 = vadd.xlane.f32.xlu1 %v1353_v47  ;;  %v2247_v48 = vpop.f32.mrf.mxu0 }
 0xdad   : > { %v1355_v49 = vpop.xlane.xlu1 %1354 }
 0xdae   : > { %v1356_v50 = vmul.f32 0.03125, %v1355_v49 }
 0xdb0   : > { %v1357_v51 = vsub.f32 %v2701_v44, %v1356_v50 }
 0xdb2   : > { %v1358_v52 = vmul.f32 %v1357_v51, %v1357_v51 }
 0xdb4   : > { %v1359_v53 = vsel %vm693_vm1, %v1358_v52, 0.0 }
 0xdb5   : > { %1360 = vadd.xlane.f32.xlu1 %v1359_v53 }
 0xe3e   : > { %v1361_v56 = vpop.xlane.xlu1 %1360 }
 0xe3f   : > { %v1362_v57 = vmul.f32 0.03125, %v1361_v56 }
 0xe41   : > { %v1363_v58 = vadd.f32 1e-05, %v1362_v57 }
 0xe43   : > { %2379 = vrsqrt.f32 %v1363_v58 }
 0xe50   : > { %v2380_v59 = vpop.eup %2379 }
 0xe51   : > { %v1365_v61 = vmul.f32 %v2380_v59, %v1357_v51  ;;  %v2354_v51 = vld [vmem:[%s2828_s9 + $0x18] sm:$0xff]  }
 0xe53   : > { %v1372_v63 = vmul.f32 %v2081_v60, %v1365_v61 }
 0xe55   : > { %v1379_v0 = vadd.f32 %v2082_v62, %v1372_v63 }
 0xe57   : > { %v1385_v1 = vpack.c.bf16 %v1379_v0, %v1379_v0 }
 0xe59   : > { %2253 = vmatmul.mubr.msk.bf16.vlgmr.msra.gmra.mxu1 %vm775_vm3, %v1385_v1 }
 0xe5a   : > { %2258 = vmatprep.mubr.msk.bf16.mxu1 %vm2405_vm2, %v2404_v45 }
 0xf19   : > { %v1443_v3 = vpop.f32.mrf.mxu1 }
 0xf1a   : > { %v1444_v4 = vadd.f32 %v2088_v2, %v1443_v3 }
 0xf1b   : > { %v2254_v5 = vpop.f32.mrf.mxu1 }
 0xf1c   : > { %v1449_v6 = vpack.c.bf16 %v1444_v4, %v1444_v4  ;;  %v2105_v4 = vld [vmem:[%s2829_s10 + $0x1] ss:$0 sm:$0xff] }
 0xf1d   : > { %v1446_v7 = vpop.f32.mrf.mxu1 }
 0xf1e   : > { %1566 = vrot.lane.b32.xlu1 %v1449_v6, %s2407_s23  ;;  %1451 = vrot.lane.b32.xlu0 %v1449_v6, %s2406_s21 }
 0xf1f   : > { %v2255_v8 = vpop.f32.mrf.mxu1 }
 0xf22   : > { %1564 = vrot.lane.b32.xlu0 %v1449_v6, %s2409_s27 }
 0xf90   : > { %v1452_v9 = vpop.permute.xlu0 %1451  ;;  %v1567_v37 = vpop.permute.xlu1 %1566 }
 0xf91   : > { %v1457_v10 = vsel %vm823_vm4, %v1452_v9, 0  ;;  %v1572_v11 = vsel %vm823_vm4, %v1567_v37, 0 }
 0xf92   : > { %2257 = vmatpush3.bf16.xpose.msra.mxu1 %v1457_v10 }
 0xf93   : > { %2268 = vmatprep.subr.bf16.mxu1 %v2404_v45 }
 0xf94   : > { %v1565_v12 = vpop.permute.xlu0 %1564 }
 0xf99   : > { %2259 = vmatmul.mubr.msk.bf16.vlgmr.msra.gmra.mxu1 %vm823_vm4, %v1449_v6 }
 0xf9a   : > { %2269 = vmatpush3.bf16.xpose.msra.mxu1 %v1572_v11  ;;  %2270 = vmatprep.mubr.msk.bf16.mxu1 %vm2405_vm2, %v2404_v45 }
 0xf9b   : > { %2280 = vmatprep.subr.bf16.mxu1 %v2404_v45 }
 0xfa1   : > { %2271 = vmatmul.mubr.msk.bf16.vlgmr.msra.gmra.mxu1 %vm823_vm4, %v1565_v12 }
 0xfa2   : > { %2282 = vmatprep.mubr.msk.bf16.mxu1 %vm2405_vm2, %v2404_v45  ;;  %2281 = vmatpush3.bf16.msra.mxu1 %v2354_v51 }
 0xfa3   : > { %2292 = vmatprep.subr.bf16.mxu1 %v2404_v45 }
0x1059   : > { %v1493_v13 = vpop.f32.mrf.mxu1 }
0x105a   : > { %v1499_v14 = vmul.f32 0.25, %v1493_v13 }
0x105b   : > { %v2260_v15 = vpop.f32.mrf.mxu1 }
0x105c   : > { %v1500_v17 = vsel %vm871_vm5, %v1499_v14, -inf  ;;  %v2355_v15 = vld [vmem:[%s2832_s13 + $0x18] sm:$0xff]  }
0x105d   : > { %1501 = vmax.xlane.f32.xlu0 %v1500_v17  ;;  %v1496_v18 = vpop.f32.mrf.mxu1 }
0x105f   : > { %v2261_v19 = vpop.f32.mrf.mxu1 }
0x1061   : > { %v1608_v20 = vpop.f32.mrf.mxu1 }
0x1062   : > { %v1614_v21 = vmul.f32 0.25, %v1608_v20 }
0x1063   : > { %v2272_v22 = vpop.f32.mrf.mxu1 }
0x1064   : > { %v1615_v23 = vsel %vm871_vm5, %v1614_v21, -inf }
0x1065   : > { %1616 = vmax.xlane.f32.xlu1 %v1615_v23  ;;  %v1611_v24 = vpop.f32.mrf.mxu1  ;;  %v2109_v23 = vld [vmem:[%s2831_s12 + $0x1] ss:$0 sm:$0xff] }
0x1067   : > { %v2273_v25 = vpop.f32.mrf.mxu1 }
0x1076   : > { %1627 = vrot.lane.b32.xlu1 %v1449_v6, %s2411_s29  ;;  %s544_s29 = scalar_lea.vmem %s2836_s17, %s2843_s25 }
0x10e6   : > { %v1502_v26 = vpop.xlane.xlu0 %1501 }
0x10e7   : > { %v1503_v27 = vsub.f32 %v1499_v14, %v1502_v26 }
0x10e9   : > { %v1504_v28 = vmul.f32 1.442695, %v1503_v27  ;;  %v2357_v27 = vld [vmem:[%s2834_s15 + $0x38] sm:$0xff]  }
0x10eb   : > { %2381 = vpow2.f32 %v1504_v28  ;;  %v2358_v28 = vld [vmem:[%s2834_s15 + $0x30] sm:$0xff]  }
0x10ee   : > { %v1617_v29 = vpop.xlane.xlu1 %1616 }
0x10ef   : > { %v1618_v30 = vsub.f32 %v1614_v21, %v1617_v29  ;;  %v2108_v21 = vld [vmem:[%s2830_s11 + $0x1] ss:$0 sm:$0xff]  ;;  %v2359_v29 = vld [vmem:[%s2834_s15 + $0x28] sm:$0xff]  }
0x10f1   : > { %v1619_v31 = vmul.f32 1.442695, %v1618_v30  ;;  %v2360_v30 = vld [vmem:[%s2834_s15 + $0x20] sm:$0xff]  }
0x10f2   : > { %v1628_v42 = vpop.permute.xlu1 %1627 }
0x10f3   : > { %2383 = vpow2.f32 %v1619_v31  ;;  %v1633_v47 = vand.u32 %v1628_v42, %v2618_v16  ;;  %v2115_v31 = vld [vmem:[%s2833_s14 + $0x1] ss:$0 sm:$0xff] }
0x10f8   : > { %v2382_v32 = vpop.eup %2381 }
0x10f9   : > { %v1506_v33 = vsel %vm871_vm5, %v2382_v32, 0.0 }
0x10fa   : > { %1507 = vadd.xlane.f32.xlu0 %v1506_v33 }
0x1100   : > { %v2384_v34 = vpop.eup %2383 }
0x1101   : > { %v1621_v35 = vsel %vm871_vm5, %v2384_v34, 0.0 }
0x1102   : > { %1622 = vadd.xlane.f32.xlu0 %v1621_v35 }
0x1118   : > { %1512 = vrot.lane.b32.xlu0 %v1449_v6, %s2408_s26 }
0x1183   : > { %v1508_v36 = vpop.xlane.xlu0 %1507 }
0x1184   : > { %2385 = vrcp.f32 %v1508_v36 }
0x118b   : > { %v1623_v38 = vpop.xlane.xlu0 %1622 }
0x118c   : > { %2387 = vrcp.f32 %v1623_v38 }
0x118f   : > { %v1513_v39 = vpop.permute.xlu0 %1512 }
0x1190   : > { %v1518_v40 = vand.u32 %v1513_v39, %v2618_v16  ;;  %v2353_v16 = vld [vmem:[%s2828_s9 + $0x10] sm:$0xff]  }
0x1191   : > { %v2386_v41 = vpop.eup %2385 }
0x1192   : > { %2263 = vmatpush3.bf16.msra.mxu0 %v1518_v40  ;;  %v1510_v43 = vmul.f32 %v2386_v41, %v2382_v32 }
0x1193   : > { %2274 = vmatprep.subr.bf16.mxu0 %v2404_v45 }
0x1194   : > { %v1511_v46 = vpack.c.bf16 %v1510_v43, %v1510_v43 }
0x1196   : > { %2265 = vmatmul.mubr.msk.bf16.vlgmr.msra.gmra.mxu0 %vm886_vm8, %v1511_v46  ;;  %v2129_v46 = vld [vmem:[%s2835_s16 + $0x1] ss:$0 sm:$0xff] }
0x1197   : > { %2275 = vmatpush3.bf16.msra.mxu0 %v1633_v47  ;;  %2276 = vmatprep.mubr.msk.bf16.mxu0 %vm2405_vm2, %v2404_v45 }
0x1198   : > { %2286 = vmatprep.subr.bf16.mxu0 %v2404_v45 }
0x1199   : > { %v2388_v48 = vpop.eup %2387 }
0x119a   : > { %v1625_v49 = vmul.f32 %v2388_v48, %v2384_v34 }
0x119c   : > { %v1626_v50 = vpack.c.bf16 %v1625_v49, %v1625_v49 }
0x119e   : > { %2277 = vmatmul.mubr.msk.bf16.vlgmr.msra.gmra.mxu0 %vm886_vm8, %v1626_v50 }
0x119f   : > { %2288 = vmatprep.mubr.msk.bf16.mxu0 %vm2405_vm2, %v2404_v45  ;;  %2287 = vmatpush3.bf16.msra.mxu0 %v2353_v16 }
0x11a0   : > { %2300 = vmatprep.subr.bf16.mxu0 %v2404_v45 }
0x1256   : > { %v1554_v52 = vpop.f32.mrf.mxu0 }
0x1257   : > { %v1563_v53 = vpack.c.bf16 %v1554_v52, %v1554_v52 }
0x1258   : > { %v2266_v54 = vpop.f32.mrf.mxu0 }
0x1259   : > { %2289 = vmatmul.mubr.msk.bf16.vlgmr.msra.gmra.mxu0 %vm823_vm4, %v1563_v53 }
0x125a   : > { %v1557_v55 = vpop.f32.mrf.mxu0  ;;  %2308 = vmatprep.mubr.msk.bf16.mxu0 %vm2405_vm2, %v2404_v45  ;;  %2301 = vmatpush3.bf16.msra.mxu0 %v2357_v27 }
0x125b   : > { %2302 = vmatprep.subr.bf16.mxu0 %v2404_v45 }
0x125c   : > { %v2267_v56 = vpop.f32.mrf.mxu0 }
0x125e   : > { %v1669_v57 = vpop.f32.mrf.mxu0  ;;  %2303 = vmatpush3.bf16.msra.mxu0 %v2358_v28 }
0x125f   : > { %v1677_v58 = vpack.c.bf16 %v1669_v57, %v1669_v57  ;;  %2304 = vmatprep.subr.bf16.mxu0 %v2404_v45 }
0x1260   : > { %v2278_v59 = vpop.f32.mrf.mxu0 }
0x1261   : > { %2283 = vmatmul.mubr.msk.bf16.vlgmr.msra.gmra.mxu1 %vm823_vm4, %v1677_v58 }
0x1262   : > { %v1672_v60 = vpop.f32.mrf.mxu0  ;;  %2296 = vmatprep.mubr.msk.bf16.mxu1 %vm2405_vm2, %v2404_v45  ;;  %2293 = vmatpush3.bf16.msra.mxu1 %v2355_v15 }
0x1263   : > { %2294 = vmatprep.subr.bf16.mxu1 %v2404_v45  ;;  %2305 = vmatpush3.bf16.msra.mxu0 %v2359_v29 }
0x1264   : > { %v2279_v61 = vpop.f32.mrf.mxu0  ;;  %2306 = vmatprep.subr.bf16.mxu0 %v2404_v45 }
0x1267   : > { %2307 = vmatpush3.bf16.msra.mxu0 %v2360_v30 }
0x1319   : > { %v1770_v62 = vpop.f32.mrf.mxu0 }
0x131b   : > { %v2290_v63 = vpop.f32.mrf.mxu0 }
0x131d   : > { %v1773_v0 = vpop.f32.mrf.mxu0 }
0x131f   : > { %v2291_v1 = vpop.f32.mrf.mxu0 }
0x1321   : > { %v1721_v2 = vpop.f32.mrf.mxu1 }
0x1322   : > { %v1771_v3 = vadd.f32 %v1770_v62, %v1721_v2 }
0x1323   : > { %v2284_v5 = vpop.f32.mrf.mxu1 }
0x1324   : > { %v1776_v6 = vadd.f32 %v1771_v3, %v2701_v44  ;;  %v2356_v44 = vld [vmem:[%s2832_s13 + $0x10] sm:$0xff]  }
0x1325   : > { %v1724_v7 = vpop.f32.mrf.mxu1  ;;  %2295 = vmatpush3.bf16.msra.mxu1 %v2356_v44 }
0x1326   : > { %v1785_v8 = vadd.f32 %v2105_v4, %v1776_v6 }
0x1327   : > { %v2285_v9 = vpop.f32.mrf.mxu1 }
0x1328   : > { %v1790_v10 = vsel %vm693_vm1, %v1785_v8, 0.0 }
0x1329   : > { %1791 = vadd.xlane.f32.xlu0 %v1790_v10 }
0x13b2   : > { %v1792_v37 = vpop.xlane.xlu0 %1791 }
0x13b3   : > { %v1793_v11 = vmul.f32 0.03125, %v1792_v37 }
0x13b5   : > { %v1794_v12 = vsub.f32 %v1785_v8, %v1793_v11 }
0x13b7   : > { %v1795_v13 = vmul.f32 %v1794_v12, %v1794_v12 }
0x13b9   : > { %v1796_v14 = vsel %vm693_vm1, %v1795_v13, 0.0 }
0x13ba   : > { %1797 = vadd.xlane.f32.xlu1 %v1796_v14 }
0x1443   : > { %v1798_v17 = vpop.xlane.xlu1 %1797 }
0x1444   : > { %v1799_v18 = vmul.f32 0.03125, %v1798_v17 }
0x1446   : > { %v1800_v19 = vadd.f32 1e-05, %v1799_v18 }
0x1448   : > { %2389 = vrsqrt.f32 %v1800_v19 }
0x1455   : > { %v2390_v20 = vpop.eup %2389 }
0x1456   : > { %v1802_v22 = vmul.f32 %v2390_v20, %v1794_v12 }
0x1458   : > { %v1809_v24 = vmul.f32 %v2108_v21, %v1802_v22 }
0x145a   : > { %v1816_v25 = vadd.f32 %v2109_v23, %v1809_v24 }
0x145c   : > { %v1822_v26 = vpack.c.bf16 %v1816_v25, %v1816_v25 }
0x145e   : > { %2297 = vmatmul.mubr.msk.bf16.vlgmr.msra.gmra.mxu1 %vm775_vm3, %v1822_v26 }
0x151e   : > { %v1880_v32 = vpop.f32.mrf.mxu1 }
0x151f   : > { %v1881_v33 = vadd.f32 %v2115_v31, %v1880_v32 }
0x1520   : > { %v2298_v34 = vpop.f32.mrf.mxu1 }
0x1521   : > { %v2119_v35 = vmul.f32 -1.702, %v1881_v33 }
0x1522   : > { %v1883_v36 = vpop.f32.mrf.mxu1 }
0x1523   : > { %v1888_v38 = vmul.f32 1.442695, %v2119_v35 }
0x1524   : > { %v2299_v39 = vpop.f32.mrf.mxu1 }
0x1525   : > { %2391 = vpow2.f32 %v1888_v38 }
0x1532   : > { %v2392_v40 = vpop.eup %2391 }
0x1533   : > { %v1890_v45 = vadd.f32 1.0, %v2392_v40 }
0x1535   : > { %2393 = vrcp.f32 %v1890_v45 }
0x1542   : > { %v2394_v41 = vpop.eup %2393 }
0x1543   : > { %v1893_v42 = vmul.f32 %v2394_v41, %v1881_v33 }
0x1545   : > { %v1903_v43 = vpack.c.bf16 %v1893_v42, %v1893_v42 }
0x1547   : > { %2309 = vmatmul.mubr.msk.bf16.vlgmr.msra.gmra.mxu0 %vm647_vm0, %v1903_v43 }
0x1607   : > { %v1973_v47 = vpop.f32.mrf.mxu0 }
0x1608   : > { %v1974_v48 = vadd.f32 %v2129_v46, %v1973_v47 }
0x1609   : > { %v2310_v49 = vpop.f32.mrf.mxu0 }
0x160a   : > { %v1979_v50 = vadd.f32 %v1974_v48, %v1785_v8 }
0x160b   : > { %v1976_v16 = vpop.f32.mrf.mxu0 }
0x160c   : > { %1981 = vst.msk [vmem:[%s544_s29] sm:$0x1] %vm1980_vm9, %v1979_v50 }
0x160d   : > { %v2311_v51 = vpop.f32.mrf.mxu0 }
0x160e PF: > { %s27_s24 = sadd.s32 1, %s2401_s24  }
0x160f   : > { %p24_p4 = scmp.ge.s32.totalorder %s27_s24, 6  }
0x1611   :  { %26 = sbr.rel (!%p24_p4) target bundleno = 3 (0x3), region = 130 }

</bundles_post_ra>
